<compile_context>
chip_gen: v7x
topology: tpu7x:2x2x1
jax: 0.10.0
libtpu: 0.0.40
codegen_flags: <defaults>
</compile_context>

<pallas_src>
import functools

import numpy as np
import jax
import jax.numpy as jnp
from jax import lax
from jax.experimental import pallas as pl
from jax.experimental.pallas import tpu as pltpu

_LANES = 128                      # TPU vreg lane width
_SUBLANES = 8                     # TPU vreg sublane count
_BN_EPS = 1e-5
_VMEM_LIMIT_BYTES = 32 * 1024 * 1024   # explicit scoped-VMEM budget (portable)
_VMEM_GUARD_BYTES = 24 * 1024 * 1024   # soft ceiling for the kernel footprint


# ----------------------------------------------------------------------------
# Trace-time constants.
# ----------------------------------------------------------------------------
@functools.lru_cache(maxsize=None)
def _conv_gather_cat_np(h, w):
    """0/1 gather matrix for conv3x3 stride2 pad1, all 9 taps concatenated along
    the output axis.  Shape (h*w, 9*ho*wo); column t*ho*wo + p selects the input
    pixel feeding output pixel p under tap t (all-zero column == zero padding).
    Cached as numpy (trace-time constant), converted to jnp at trace time."""
    ho, wo = (h + 1) // 2, (w + 1) // 2
    g = np.zeros((h * w, 9 * ho * wo), np.float32)
    for kh in range(3):
        for kw in range(3):
            t = kh * 3 + kw
            for oh in range(ho):
                ih = 2 * oh - 1 + kh
                if ih < 0 or ih >= h:
                    continue
                for ow in range(wo):
                    iw = 2 * ow - 1 + kw
                    if iw < 0 or iw >= w:
                        continue
                    g[ih * w + iw, t * (ho * wo) + oh * wo + ow] = 1.0
    return g


def _fold_conv_bn(w, b, gamma, beta, mean, var, cin_pad, eps=_BN_EPS):
    """Fold conv bias + inference BatchNorm into per-tap weights (exact)."""
    cout, cin = w.shape[0], w.shape[1]
    s = gamma / jnp.sqrt(var + eps)
    wf = w * s[:, None, None, None]
    # (cout, cin, kh, kw) -> (kh*3+kw, cout, cin): tap-major, channels-first math.
    wt = jnp.transpose(wf, (2, 3, 0, 1)).reshape(9, cout, cin)
    if cin_pad > cin:
        wt = jnp.pad(wt, ((0, 0), (0, 0), (0, cin_pad - cin)))
    shift = b * s + beta - mean * s                    # (cout,)
    return wt, shift


def _block_diag_taps(wt, b_tile):
    """(9, cout, cin) -> (9, b_tile*cout, b_tile*cin) block-diagonal bf16 weights
    (rows/cols ordered (example, channel)) so the channel mix of a whole batch
    tile is one MXU matmul per tap."""
    nine, cout, cin = wt.shape
    eye = jnp.eye(b_tile, dtype=jnp.float32)
    bd = jnp.einsum('ij,toc->tiojc', eye, wt.astype(jnp.float32))
    return bd.reshape(nine, b_tile * cout, b_tile * cin).astype(jnp.bfloat16)


def _pick_b_tile(n):
    """Batch tile: target M = b_tile*C >= 128 MXU rows, while keeping >= 4 grid
    steps when the batch allows so v7x's two TensorCores both stay fed."""
    if n >= 64:
        return 16
    if n >= 32:
        return 8
    return min(16, max(_SUBLANES, -(-n // _SUBLANES) * _SUBLANES))


# ----------------------------------------------------------------------------
# Fused kernel: one batch tile per grid step.  Feature layout (B*C, spatial):
# rows ordered (example, channel), spatial on the lanes.
# ----------------------------------------------------------------------------
def _critic_fused_kernel(x_ref,
                         g1_ref, w1_ref, s1_ref,
                         g2_ref, w2_ref, s2_ref,
                         g3_ref, w3_ref, s3_ref,
                         ls_s_ref, ls_t_ref, wfc_ref, ssum_ref, bfc_ref,
                         o_ref):
    b_tile, c1, hw = x_ref.shape

    def conv_bn_relu(x16, g_ref, w_ref, sh_ref):
        # x16: (b_tile*cin, hw_in) bf16.
        # g_ref: (hw_in, 9*m_out) bf16 tap-concatenated 0/1 gather matrix.
        # w_ref: (9, b_tile*cout, b_tile*cin) bf16 block-diag folded conv*BN weights.
        # sh_ref: (b_tile*cout, 1) f32 folded bias+BN shift.
        m_out = g_ref.shape[1] // 9
        # One fat gather matmul for the whole batch tile and all 9 taps (MXU).
        q = jnp.dot(x16, g_ref[...], preferred_element_type=jnp.float32)
        q16 = q.astype(jnp.bfloat16)          # lossless: 0/1 gather of bf16 values
        acc = sh_ref[...]                     # shift seeds the accumulator
        for t in range(9):                    # static unroll over the 3x3 taps
            acc = acc + jnp.dot(w_ref[t], q16[:, t * m_out:(t + 1) * m_out],
                                preferred_element_type=jnp.float32)
        return jnp.maximum(acc, 0.0)

    x = x_ref[...].reshape(b_tile * c1, hw).astype(jnp.bfloat16)      # (B*C, H*W)
    y = conv_bn_relu(x, g1_ref, w1_ref, s1_ref)                       # stem conv1
    y = conv_bn_relu(y.astype(jnp.bfloat16), g2_ref, w2_ref, s2_ref)  # stem conv2
    y = conv_bn_relu(y.astype(jnp.bfloat16), g3_ref, w3_ref, s3_ref)  # stem conv3
    # arch backbone / neck / head are Identity (NodeNum == 0).
    # TODO(synk): bridge1/bridge2 (builder.build_norm_cell) unavailable -> identity.

    # lastact: BatchNorm + ReLU + AdaptiveAvgPool2d(1)   (rows = (example, channel))
    z = jnp.maximum(y * ls_s_ref[...] + ls_t_ref[...], 0.0)          # (B*C, P)
    pooled = jnp.sum(z, axis=1, keepdims=True)                       # 1/P folded into wfc

    # classifier: Linear(C, num_classes) as a reshape-free block contraction:
    #   prod[(b,c),k] = pooled[(b,c)] * fc_w[k,c]/P ; logits = block-row-sum @ prod
    prod = pooled * wfc_ref[...]                                     # (B*C, ncpad)
    logits = jnp.dot(ssum_ref[...], prod, preferred_element_type=jnp.float32)
    o_ref[...] = logits + bfc_ref[...]                               # (B, ncpad), lane-dense


# ----------------------------------------------------------------------------
# Wrapper: builds constants, sets up the batch-tiled grid, runs the kernel.
# ----------------------------------------------------------------------------
def flexible_critic_forward(img_nchw, stem_params, last_bn, fc_w, fc_b,
                            num_classes, b_tile=None):
    n, cin_img, h, w = img_nchw.shape
    hw = h * w
    c_feat = stem_params[0][0].shape[0]                 # backbone.C_in (stem width)
    if b_tile is None:
        b_tile = _pick_b_tile(n)
    n_pad = -(-n // b_tile) * b_tile
    c_pad1 = -(-cin_img // _SUBLANES) * _SUBLANES       # pad 3 -> 8 input channels

    # Image stays f32 (cast to bf16 inside the kernel); pad channels + batch once.
    x = img_nchw.reshape(n, cin_img, hw).astype(jnp.float32)
    x = jnp.pad(x, ((0, n_pad - n), (0, c_pad1 - cin_img), (0, 0)))

    def const_spec(a):
        nd = a.ndim
        # Constant block index -> resident in VMEM, fetched once.
        return pl.BlockSpec(a.shape, lambda i, nd=nd: (0,) * nd)

    args = [x]
    specs = [pl.BlockSpec((b_tile, c_pad1, hw), lambda i: (i, 0, 0))]
    const_bytes = 0

    ih, iw = h, w
    cin_l = c_pad1
    for (cw, cb, gmm, bt, mn, vr) in stem_params:
        g_cat = jnp.asarray(_conv_gather_cat_np(ih, iw), jnp.bfloat16)   # 0/1 exact
        wt, shift = _fold_conv_bn(cw, cb, gmm, bt, mn, vr, cin_pad=cin_l)
        bdw = _block_diag_taps(wt, b_tile)                               # (9, B*co, B*ci)
        sh = jnp.tile(shift, b_tile).reshape(-1, 1).astype(jnp.float32)  # (B*co, 1)
        args += [g_cat, bdw, sh]
        specs += [const_spec(g_cat), const_spec(bdw), const_spec(sh)]
        const_bytes += int(g_cat.size) * 2 + int(bdw.size) * 2 + int(sh.size) * 4
        ih, iw = (ih + 1) // 2, (iw + 1) // 2
        cin_l = cw.shape[0]

    p_last = ih * iw                                     # spatial size after the stem
    gmm, bt, mn, vr = last_bn
    s = gmm / jnp.sqrt(vr + _BN_EPS)
    c_out = fc_w.shape[1]
    ls_scale = jnp.tile(s, b_tile).reshape(-1, 1).astype(jnp.float32)
    ls_shift = jnp.tile(bt - mn * s, b_tile).reshape(-1, 1).astype(jnp.float32)

    ncpad = -(-num_classes // _LANES) * _LANES
    wfcT = jnp.zeros((c_out, ncpad), jnp.float32).at[:, :num_classes].set(fc_w.T / p_last)
    wfc_tiled = jnp.tile(wfcT, (b_tile, 1))              # (B*C, ncpad), 1/P folded in
    ssum = jnp.kron(jnp.eye(b_tile, dtype=jnp.float32),
                    jnp.ones((1, c_out), jnp.float32))   # (B, B*C) block row-sum
    bfc = jnp.zeros((1, ncpad), jnp.float32).at[0, :num_classes].set(fc_b)

    args += [ls_scale, ls_shift, wfc_tiled, ssum, bfc]
    specs += [const_spec(a) for a in (ls_scale, ls_shift, wfc_tiled, ssum, bfc)]
    const_bytes += sum(int(a.size) * 4 for a in (ls_scale, ls_shift, wfc_tiled, ssum, bfc))

    # VMEM footprint guard: gather constants grow ~O((H*W)^2); they fit easily at
    # 16x16 / 32x32 observations but would exceed v7x's 64 MiB VMEM near 64x64.
    howo1 = -(-h // 2) * -(-w // 2)
    x_block_bytes = b_tile * c_pad1 * hw * 4
    out_block_bytes = b_tile * ncpad * 4
    interm_bytes = b_tile * c_pad1 * hw * 2 + b_tile * c_feat * 9 * howo1 * 6
    est_bytes = 2 * (const_bytes + x_block_bytes + out_block_bytes) + interm_bytes
    if est_bytes > _VMEM_GUARD_BYTES:
        # TODO(synk): large observations need a halo-tiled conv1 path instead of
        # the gather-matmul stem; not implemented here.
        raise ValueError(
            "FlexibleCritic Pallas kernel: estimated VMEM footprint "
            f"{est_bytes / 2**20:.1f} MiB exceeds the "
            f"{_VMEM_GUARD_BYTES / 2**20:.0f} MiB budget "
            "(input resolution too large for the gather-matmul stem).")

    out = pl.pallas_call(
        _critic_fused_kernel,
        out_shape=jax.ShapeDtypeStruct((n_pad, ncpad), jnp.float32),
        grid=(n_pad // b_tile,),                         # one batch tile per step
        in_specs=specs,
        out_specs=pl.BlockSpec((b_tile, ncpad), lambda i: (i, 0)),
        compiler_params=pltpu.CompilerParams(
            dimension_semantics=("parallel",),           # megacore sharding on v7x
            vmem_limit_bytes=_VMEM_LIMIT_BYTES,
        ),
    )(*args)
    return out[:n, :num_classes]


# ----------------------------------------------------------------------------
# FlexibleCritic (prediction path) with parameters built like init_weights():
# kaiming conv / constant BN / normal(0.01) Linear.
# ----------------------------------------------------------------------------
class FlexibleCriticPallas:
    def __init__(self, key, c_in=8, num_classes=10):
        self.c_in = c_in
        self.num_classes = num_classes
        keys = jax.random.split(key, 4)

        def conv_block(k, cin, cout):
            std = (2.0 / (cout * 3 * 3)) ** 0.5          # kaiming fan_out, relu
            wgt = std * jax.random.normal(k, (cout, cin, 3, 3), jnp.float32)
            bias = jnp.zeros((cout,), jnp.float32)
            gamma = jnp.ones((cout,), jnp.float32)       # constant_init(m, 1)
            beta = jnp.zeros((cout,), jnp.float32)
            mean = jnp.zeros((cout,), jnp.float32)       # BN running stats (inference)
            var = jnp.ones((cout,), jnp.float32)
            return (wgt, bias, gamma, beta, mean, var)

        self.stem = [
            conv_block(keys[0], 3, c_in),
            conv_block(keys[1], c_in, c_in),
            conv_block(keys[2], c_in, c_in),
        ]
        # lastact BN over cls_head.C_out (== c_in since arch blocks are identity)
        self.bn_last = (jnp.ones((c_in,), jnp.float32), jnp.zeros((c_in,), jnp.float32),
                        jnp.zeros((c_in,), jnp.float32), jnp.ones((c_in,), jnp.float32))
        # classifier: normal_init(std=0.01)
        self.fc_w = 0.01 * jax.random.normal(keys[3], (num_classes, c_in), jnp.float32)
        self.fc_b = jnp.zeros((num_classes,), jnp.float32)

    def predict(self, img_nchw):
        return flexible_critic_forward(img_nchw.astype(jnp.float32), self.stem,
                                       self.bn_last, self.fc_w, self.fc_b,
                                       self.num_classes)

    def forward(self, img, gt_label=None):
        if gt_label is not None:
            # TODO(synk): builder-built loss/acc not translatable; prediction only.
            return {"pred": self.predict(img)}
        return {"pred": self.predict(img)}


# ----------------------------------------------------------------------------
# Pure-JAX (XLA) f32 reference of the same forward pass, for validation.
# ----------------------------------------------------------------------------
def _reference_forward(img_nchw, model, eps=_BN_EPS):
    x = img_nchw.astype(jnp.float32)
    for (wgt, bias, gamma, beta, mean, var) in model.stem:
        x = lax.conv_general_dilated(
            x, wgt, (2, 2), ((1, 1), (1, 1)),
            dimension_numbers=("NCHW", "OIHW", "NCHW"),
            precision=lax.Precision.HIGHEST) + bias[None, :, None, None]
        x = ((x - mean[None, :, None, None]) /
             jnp.sqrt(var[None, :, None, None] + eps) * gamma[None, :, None, None]
             + beta[None, :, None, None])
        x = jnp.maximum(x, 0.0)
    gamma, beta, mean, var = model.bn_last
    x = ((x - mean[None, :, None, None]) /
         jnp.sqrt(var[None, :, None, None] + eps) * gamma[None, :, None, None]
         + beta[None, :, None, None])
    x = jnp.maximum(x, 0.0)
    pooled = jnp.mean(x, axis=(2, 3))
    return pooled @ model.fc_w.T + model.fc_b[None, :]


if __name__ == "__main__":
    key = jax.random.PRNGKey(0)
    k_img, k_model = jax.random.split(key)
    img = jax.random.normal(k_img, (2, 3, 16, 16), jnp.float32)  # NCHW like PyTorch

    model = FlexibleCriticPallas(k_model, c_in=8, num_classes=10)
    out = model.forward(img, gt_label=None)
    logits = jax.block_until_ready(out["pred"])

    assert logits.shape == (2, 10)
    assert bool(jnp.all(jnp.isfinite(logits)))

    ref = jax.block_until_ready(_reference_forward(img, model))
    np.testing.assert_allclose(np.asarray(logits), np.asarray(ref),
                               atol=5e-3, rtol=5e-2)
    print("KERNEL_OK")
</pallas_src>

<mosaic_0001>
module attributes {stable_mosaic.version = 11 : i64} {
  func.func @_critic_fused_kernel(%arg0: i32, %arg1: memref<8x8x256xf32, #tpu.memory_space<vmem>>, %arg2: memref<256x576xbf16, #tpu.memory_space<vmem>>, %arg3: memref<9x64x64xbf16, #tpu.memory_space<vmem>>, %arg4: memref<64x1xf32, #tpu.memory_space<vmem>>, %arg5: memref<64x144xbf16, #tpu.memory_space<vmem>>, %arg6: memref<9x64x64xbf16, #tpu.memory_space<vmem>>, %arg7: memref<64x1xf32, #tpu.memory_space<vmem>>, %arg8: memref<16x36xbf16, #tpu.memory_space<vmem>>, %arg9: memref<9x64x64xbf16, #tpu.memory_space<vmem>>, %arg10: memref<64x1xf32, #tpu.memory_space<vmem>>, %arg11: memref<64x1xf32, #tpu.memory_space<vmem>>, %arg12: memref<64x1xf32, #tpu.memory_space<vmem>>, %arg13: memref<64x128xf32, #tpu.memory_space<vmem>>, %arg14: memref<8x64xf32, #tpu.memory_space<vmem>>, %arg15: memref<1x128xf32, #tpu.memory_space<vmem>>, %arg16: memref<8x128xf32, #tpu.memory_space<vmem>>) attributes {dimension_semantics = [#tpu.dimension_semantics<parallel>], iteration_bounds = array<i64: 1>, scalar_prefetch = 0 : i64, scratch_operands = 0 : i64, tpu.core_type = #tpu.core_type<tc>, window_params = [{transform_indices = @transform_0, window_bounds = array<i64: 8, 8, 256>}, {pipeline_mode = #tpu.pipeline_mode<synchronous>, transform_indices = @transform_1, window_bounds = array<i64: 256, 576>}, {pipeline_mode = #tpu.pipeline_mode<synchronous>, transform_indices = @transform_2, window_bounds = array<i64: 9, 64, 64>}, {pipeline_mode = #tpu.pipeline_mode<synchronous>, transform_indices = @transform_3, window_bounds = array<i64: 64, 1>}, {pipeline_mode = #tpu.pipeline_mode<synchronous>, transform_indices = @transform_4, window_bounds = array<i64: 64, 144>}, {pipeline_mode = #tpu.pipeline_mode<synchronous>, transform_indices = @transform_5, window_bounds = array<i64: 9, 64, 64>}, {pipeline_mode = #tpu.pipeline_mode<synchronous>, transform_indices = @transform_6, window_bounds = array<i64: 64, 1>}, {pipeline_mode = #tpu.pipeline_mode<synchronous>, transform_indices = @transform_7, window_bounds = array<i64: 16, 36>}, {pipeline_mode = #tpu.pipeline_mode<synchronous>, transform_indices = @transform_8, window_bounds = array<i64: 9, 64, 64>}, {pipeline_mode = #tpu.pipeline_mode<synchronous>, transform_indices = @transform_9, window_bounds = array<i64: 64, 1>}, {pipeline_mode = #tpu.pipeline_mode<synchronous>, transform_indices = @transform_10, window_bounds = array<i64: 64, 1>}, {pipeline_mode = #tpu.pipeline_mode<synchronous>, transform_indices = @transform_11, window_bounds = array<i64: 64, 1>}, {pipeline_mode = #tpu.pipeline_mode<synchronous>, transform_indices = @transform_12, window_bounds = array<i64: 64, 128>}, {pipeline_mode = #tpu.pipeline_mode<synchronous>, transform_indices = @transform_13, window_bounds = array<i64: 8, 64>}, {pipeline_mode = #tpu.pipeline_mode<synchronous>, transform_indices = @transform_14, window_bounds = array<i64: 1, 128>}, {transform_indices = @transform_15, window_bounds = array<i64: 8, 128>}]} {
    %c0 = arith.constant 0 : index
    %c0_0 = arith.constant 0 : index
    %c0_1 = arith.constant 0 : index
    %0 = vector.load %arg1[%c0, %c0_0, %c0_1] : memref<8x8x256xf32, #tpu.memory_space<vmem>>, vector<8x8x256xf32>
    %1 = vector.shape_cast %0 : vector<8x8x256xf32> to vector<64x256xf32>
    %2 = arith.truncf %1 : vector<64x256xf32> to vector<64x256xbf16>
    %c0_2 = arith.constant 0 : index
    %c0_3 = arith.constant 0 : index
    %3 = vector.load %arg2[%c0_2, %c0_3] : memref<256x576xbf16, #tpu.memory_space<vmem>>, vector<256x576xbf16>
    %cst = arith.constant dense<0.000000e+00> : vector<64x576xf32>
    %4 = tpu.matmul %2, %3, %cst {dimension_numbers = #tpu.dot_dimension_numbers<[1], [0], [0], [1], [0, 0, 1, 1], [], []>} : vector<64x256xbf16>, vector<256x576xbf16>, vector<64x576xf32> -> vector<64x576xf32>
    %5 = arith.truncf %4 : vector<64x576xf32> to vector<64x576xbf16>
    %c0_4 = arith.constant 0 : index
    %c0_5 = arith.constant 0 : index
    %6 = vector.load %arg4[%c0_4, %c0_5] : memref<64x1xf32, #tpu.memory_space<vmem>>, vector<64x1xf32>
    %c0_6 = arith.constant 0 : index
    %c0_7 = arith.constant 0 : index
    %c0_8 = arith.constant 0 : index
    %7 = vector.load %arg3[%c0_6, %c0_7, %c0_8] : memref<9x64x64xbf16, #tpu.memory_space<vmem>>, vector<1x64x64xbf16>
    %8 = vector.shape_cast %7 : vector<1x64x64xbf16> to vector<64x64xbf16>
    %9 = vector.extract_strided_slice %5 {offsets = [0, 0], sizes = [64, 64], strides = [1, 1]} : vector<64x576xbf16> to vector<64x64xbf16>
    %cst_9 = arith.constant dense<0.000000e+00> : vector<64x64xf32>
    %10 = tpu.matmul %8, %9, %cst_9 {dimension_numbers = #tpu.dot_dimension_numbers<[1], [0], [0], [1], [0, 0, 1, 1], [], []>} : vector<64x64xbf16>, vector<64x64xbf16>, vector<64x64xf32> -> vector<64x64xf32>
    %11 = vector.broadcast %6 : vector<64x1xf32> to vector<64x64xf32>
    %12 = arith.addf %11, %10 : vector<64x64xf32>
    %c1 = arith.constant 1 : index
    %c0_10 = arith.constant 0 : index
    %c0_11 = arith.constant 0 : index
    %13 = vector.load %arg3[%c1, %c0_10, %c0_11] : memref<9x64x64xbf16, #tpu.memory_space<vmem>>, vector<1x64x64xbf16>
    %14 = vector.shape_cast %13 : vector<1x64x64xbf16> to vector<64x64xbf16>
    %15 = vector.extract_strided_slice %5 {offsets = [0, 64], sizes = [64, 64], strides = [1, 1]} : vector<64x576xbf16> to vector<64x64xbf16>
    %cst_12 = arith.constant dense<0.000000e+00> : vector<64x64xf32>
    %16 = tpu.matmul %14, %15, %cst_12 {dimension_numbers = #tpu.dot_dimension_numbers<[1], [0], [0], [1], [0, 0, 1, 1], [], []>} : vector<64x64xbf16>, vector<64x64xbf16>, vector<64x64xf32> -> vector<64x64xf32>
    %17 = arith.addf %12, %16 : vector<64x64xf32>
    %c2 = arith.constant 2 : index
    %c0_13 = arith.constant 0 : index
    %c0_14 = arith.constant 0 : index
    %18 = vector.load %arg3[%c2, %c0_13, %c0_14] : memref<9x64x64xbf16, #tpu.memory_space<vmem>>, vector<1x64x64xbf16>
    %19 = vector.shape_cast %18 : vector<1x64x64xbf16> to vector<64x64xbf16>
    %20 = vector.extract_strided_slice %5 {offsets = [0, 128], sizes = [64, 64], strides = [1, 1]} : vector<64x576xbf16> to vector<64x64xbf16>
    %cst_15 = arith.constant dense<0.000000e+00> : vector<64x64xf32>
    %21 = tpu.matmul %19, %20, %cst_15 {dimension_numbers = #tpu.dot_dimension_numbers<[1], [0], [0], [1], [0, 0, 1, 1], [], []>} : vector<64x64xbf16>, vector<64x64xbf16>, vector<64x64xf32> -> vector<64x64xf32>
    %22 = arith.addf %17, %21 : vector<64x64xf32>
    %c3 = arith.constant 3 : index
    %c0_16 = arith.constant 0 : index
    %c0_17 = arith.constant 0 : index
    %23 = vector.load %arg3[%c3, %c0_16, %c0_17] : memref<9x64x64xbf16, #tpu.memory_space<vmem>>, vector<1x64x64xbf16>
    %24 = vector.shape_cast %23 : vector<1x64x64xbf16> to vector<64x64xbf16>
    %25 = vector.extract_strided_slice %5 {offsets = [0, 192], sizes = [64, 64], strides = [1, 1]} : vector<64x576xbf16> to vector<64x64xbf16>
    %cst_18 = arith.constant dense<0.000000e+00> : vector<64x64xf32>
    %26 = tpu.matmul %24, %25, %cst_18 {dimension_numbers = #tpu.dot_dimension_numbers<[1], [0], [0], [1], [0, 0, 1, 1], [], []>} : vector<64x64xbf16>, vector<64x64xbf16>, vector<64x64xf32> -> vector<64x64xf32>
    %27 = arith.addf %22, %26 : vector<64x64xf32>
    %c4 = arith.constant 4 : index
    %c0_19 = arith.constant 0 : index
    %c0_20 = arith.constant 0 : index
    %28 = vector.load %arg3[%c4, %c0_19, %c0_20] : memref<9x64x64xbf16, #tpu.memory_space<vmem>>, vector<1x64x64xbf16>
    %29 = vector.shape_cast %28 : vector<1x64x64xbf16> to vector<64x64xbf16>
    %30 = vector.extract_strided_slice %5 {offsets = [0, 256], sizes = [64, 64], strides = [1, 1]} : vector<64x576xbf16> to vector<64x64xbf16>
    %cst_21 = arith.constant dense<0.000000e+00> : vector<64x64xf32>
    %31 = tpu.matmul %29, %30, %cst_21 {dimension_numbers = #tpu.dot_dimension_numbers<[1], [0], [0], [1], [0, 0, 1, 1], [], []>} : vector<64x64xbf16>, vector<64x64xbf16>, vector<64x64xf32> -> vector<64x64xf32>
    %32 = arith.addf %27, %31 : vector<64x64xf32>
    %c5 = arith.constant 5 : index
    %c0_22 = arith.constant 0 : index
    %c0_23 = arith.constant 0 : index
    %33 = vector.load %arg3[%c5, %c0_22, %c0_23] : memref<9x64x64xbf16, #tpu.memory_space<vmem>>, vector<1x64x64xbf16>
    %34 = vector.shape_cast %33 : vector<1x64x64xbf16> to vector<64x64xbf16>
    %35 = vector.extract_strided_slice %5 {offsets = [0, 320], sizes = [64, 64], strides = [1, 1]} : vector<64x576xbf16> to vector<64x64xbf16>
    %cst_24 = arith.constant dense<0.000000e+00> : vector<64x64xf32>
    %36 = tpu.matmul %34, %35, %cst_24 {dimension_numbers = #tpu.dot_dimension_numbers<[1], [0], [0], [1], [0, 0, 1, 1], [], []>} : vector<64x64xbf16>, vector<64x64xbf16>, vector<64x64xf32> -> vector<64x64xf32>
    %37 = arith.addf %32, %36 : vector<64x64xf32>
    %c6 = arith.constant 6 : index
    %c0_25 = arith.constant 0 : index
    %c0_26 = arith.constant 0 : index
    %38 = vector.load %arg3[%c6, %c0_25, %c0_26] : memref<9x64x64xbf16, #tpu.memory_space<vmem>>, vector<1x64x64xbf16>
    %39 = vector.shape_cast %38 : vector<1x64x64xbf16> to vector<64x64xbf16>
    %40 = vector.extract_strided_slice %5 {offsets = [0, 384], sizes = [64, 64], strides = [1, 1]} : vector<64x576xbf16> to vector<64x64xbf16>
    %cst_27 = arith.constant dense<0.000000e+00> : vector<64x64xf32>
    %41 = tpu.matmul %39, %40, %cst_27 {dimension_numbers = #tpu.dot_dimension_numbers<[1], [0], [0], [1], [0, 0, 1, 1], [], []>} : vector<64x64xbf16>, vector<64x64xbf16>, vector<64x64xf32> -> vector<64x64xf32>
    %42 = arith.addf %37, %41 : vector<64x64xf32>
    %c7 = arith.constant 7 : index
    %c0_28 = arith.constant 0 : index
    %c0_29 = arith.constant 0 : index
    %43 = vector.load %arg3[%c7, %c0_28, %c0_29] : memref<9x64x64xbf16, #tpu.memory_space<vmem>>, vector<1x64x64xbf16>
    %44 = vector.shape_cast %43 : vector<1x64x64xbf16> to vector<64x64xbf16>
    %45 = vector.extract_strided_slice %5 {offsets = [0, 448], sizes = [64, 64], strides = [1, 1]} : vector<64x576xbf16> to vector<64x64xbf16>
    %cst_30 = arith.constant dense<0.000000e+00> : vector<64x64xf32>
    %46 = tpu.matmul %44, %45, %cst_30 {dimension_numbers = #tpu.dot_dimension_numbers<[1], [0], [0], [1], [0, 0, 1, 1], [], []>} : vector<64x64xbf16>, vector<64x64xbf16>, vector<64x64xf32> -> vector<64x64xf32>
    %47 = arith.addf %42, %46 : vector<64x64xf32>
    %c8 = arith.constant 8 : index
    %c0_31 = arith.constant 0 : index
    %c0_32 = arith.constant 0 : index
    %48 = vector.load %arg3[%c8, %c0_31, %c0_32] : memref<9x64x64xbf16, #tpu.memory_space<vmem>>, vector<1x64x64xbf16>
    %49 = vector.shape_cast %48 : vector<1x64x64xbf16> to vector<64x64xbf16>
    %50 = vector.extract_strided_slice %5 {offsets = [0, 512], sizes = [64, 64], strides = [1, 1]} : vector<64x576xbf16> to vector<64x64xbf16>
    %cst_33 = arith.constant dense<0.000000e+00> : vector<64x64xf32>
    %51 = tpu.matmul %49, %50, %cst_33 {dimension_numbers = #tpu.dot_dimension_numbers<[1], [0], [0], [1], [0, 0, 1, 1], [], []>} : vector<64x64xbf16>, vector<64x64xbf16>, vector<64x64xf32> -> vector<64x64xf32>
    %52 = arith.addf %47, %51 : vector<64x64xf32>
    %cst_34 = arith.constant 0.000000e+00 : f32
    %53 = vector.broadcast %cst_34 : f32 to vector<64x64xf32>
    %54 = arith.maximumf %52, %53 : vector<64x64xf32>
    %55 = arith.truncf %54 : vector<64x64xf32> to vector<64x64xbf16>
    %c0_35 = arith.constant 0 : index
    %c0_36 = arith.constant 0 : index
    %56 = vector.load %arg5[%c0_35, %c0_36] : memref<64x144xbf16, #tpu.memory_space<vmem>>, vector<64x144xbf16>
    %cst_37 = arith.constant dense<0.000000e+00> : vector<64x144xf32>
    %57 = tpu.matmul %55, %56, %cst_37 {dimension_numbers = #tpu.dot_dimension_numbers<[1], [0], [0], [1], [0, 0, 1, 1], [], []>} : vector<64x64xbf16>, vector<64x144xbf16>, vector<64x144xf32> -> vector<64x144xf32>
    %58 = arith.truncf %57 : vector<64x144xf32> to vector<64x144xbf16>
    %c0_38 = arith.constant 0 : index
    %c0_39 = arith.constant 0 : index
    %59 = vector.load %arg7[%c0_38, %c0_39] : memref<64x1xf32, #tpu.memory_space<vmem>>, vector<64x1xf32>
    %c0_40 = arith.constant 0 : index
    %c0_41 = arith.constant 0 : index
    %c0_42 = arith.constant 0 : index
    %60 = vector.load %arg6[%c0_40, %c0_41, %c0_42] : memref<9x64x64xbf16, #tpu.memory_space<vmem>>, vector<1x64x64xbf16>
    %61 = vector.shape_cast %60 : vector<1x64x64xbf16> to vector<64x64xbf16>
    %62 = vector.extract_strided_slice %58 {offsets = [0, 0], sizes = [64, 16], strides = [1, 1]} : vector<64x144xbf16> to vector<64x16xbf16>
    %cst_43 = arith.constant dense<0.000000e+00> : vector<64x16xf32>
    %63 = tpu.matmul %61, %62, %cst_43 {dimension_numbers = #tpu.dot_dimension_numbers<[1], [0], [0], [1], [0, 0, 1, 1], [], []>} : vector<64x64xbf16>, vector<64x16xbf16>, vector<64x16xf32> -> vector<64x16xf32>
    %64 = vector.broadcast %59 : vector<64x1xf32> to vector<64x16xf32>
    %65 = arith.addf %64, %63 : vector<64x16xf32>
    %c1_44 = arith.constant 1 : index
    %c0_45 = arith.constant 0 : index
    %c0_46 = arith.constant 0 : index
    %66 = vector.load %arg6[%c1_44, %c0_45, %c0_46] : memref<9x64x64xbf16, #tpu.memory_space<vmem>>, vector<1x64x64xbf16>
    %67 = vector.shape_cast %66 : vector<1x64x64xbf16> to vector<64x64xbf16>
    %68 = vector.extract_strided_slice %58 {offsets = [0, 16], sizes = [64, 16], strides = [1, 1]} : vector<64x144xbf16> to vector<64x16xbf16>
    %cst_47 = arith.constant dense<0.000000e+00> : vector<64x16xf32>
    %69 = tpu.matmul %67, %68, %cst_47 {dimension_numbers = #tpu.dot_dimension_numbers<[1], [0], [0], [1], [0, 0, 1, 1], [], []>} : vector<64x64xbf16>, vector<64x16xbf16>, vector<64x16xf32> -> vector<64x16xf32>
    %70 = arith.addf %65, %69 : vector<64x16xf32>
    %c2_48 = arith.constant 2 : index
    %c0_49 = arith.constant 0 : index
    %c0_50 = arith.constant 0 : index
    %71 = vector.load %arg6[%c2_48, %c0_49, %c0_50] : memref<9x64x64xbf16, #tpu.memory_space<vmem>>, vector<1x64x64xbf16>
    %72 = vector.shape_cast %71 : vector<1x64x64xbf16> to vector<64x64xbf16>
    %73 = vector.extract_strided_slice %58 {offsets = [0, 32], sizes = [64, 16], strides = [1, 1]} : vector<64x144xbf16> to vector<64x16xbf16>
    %cst_51 = arith.constant dense<0.000000e+00> : vector<64x16xf32>
    %74 = tpu.matmul %72, %73, %cst_51 {dimension_numbers = #tpu.dot_dimension_numbers<[1], [0], [0], [1], [0, 0, 1, 1], [], []>} : vector<64x64xbf16>, vector<64x16xbf16>, vector<64x16xf32> -> vector<64x16xf32>
    %75 = arith.addf %70, %74 : vector<64x16xf32>
    %c3_52 = arith.constant 3 : index
    %c0_53 = arith.constant 0 : index
    %c0_54 = arith.constant 0 : index
    %76 = vector.load %arg6[%c3_52, %c0_53, %c0_54] : memref<9x64x64xbf16, #tpu.memory_space<vmem>>, vector<1x64x64xbf16>
    %77 = vector.shape_cast %76 : vector<1x64x64xbf16> to vector<64x64xbf16>
    %78 = vector.extract_strided_slice %58 {offsets = [0, 48], sizes = [64, 16], strides = [1, 1]} : vector<64x144xbf16> to vector<64x16xbf16>
    %cst_55 = arith.constant dense<0.000000e+00> : vector<64x16xf32>
    %79 = tpu.matmul %77, %78, %cst_55 {dimension_numbers = #tpu.dot_dimension_numbers<[1], [0], [0], [1], [0, 0, 1, 1], [], []>} : vector<64x64xbf16>, vector<64x16xbf16>, vector<64x16xf32> -> vector<64x16xf32>
    %80 = arith.addf %75, %79 : vector<64x16xf32>
    %c4_56 = arith.constant 4 : index
    %c0_57 = arith.constant 0 : index
    %c0_58 = arith.constant 0 : index
    %81 = vector.load %arg6[%c4_56, %c0_57, %c0_58] : memref<9x64x64xbf16, #tpu.memory_space<vmem>>, vector<1x64x64xbf16>
    %82 = vector.shape_cast %81 : vector<1x64x64xbf16> to vector<64x64xbf16>
    %83 = vector.extract_strided_slice %58 {offsets = [0, 64], sizes = [64, 16], strides = [1, 1]} : vector<64x144xbf16> to vector<64x16xbf16>
    %cst_59 = arith.constant dense<0.000000e+00> : vector<64x16xf32>
    %84 = tpu.matmul %82, %83, %cst_59 {dimension_numbers = #tpu.dot_dimension_numbers<[1], [0], [0], [1], [0, 0, 1, 1], [], []>} : vector<64x64xbf16>, vector<64x16xbf16>, vector<64x16xf32> -> vector<64x16xf32>
    %85 = arith.addf %80, %84 : vector<64x16xf32>
    %c5_60 = arith.constant 5 : index
    %c0_61 = arith.constant 0 : index
    %c0_62 = arith.constant 0 : index
    %86 = vector.load %arg6[%c5_60, %c0_61, %c0_62] : memref<9x64x64xbf16, #tpu.memory_space<vmem>>, vector<1x64x64xbf16>
    %87 = vector.shape_cast %86 : vector<1x64x64xbf16> to vector<64x64xbf16>
    %88 = vector.extract_strided_slice %58 {offsets = [0, 80], sizes = [64, 16], strides = [1, 1]} : vector<64x144xbf16> to vector<64x16xbf16>
    %cst_63 = arith.constant dense<0.000000e+00> : vector<64x16xf32>
    %89 = tpu.matmul %87, %88, %cst_63 {dimension_numbers = #tpu.dot_dimension_numbers<[1], [0], [0], [1], [0, 0, 1, 1], [], []>} : vector<64x64xbf16>, vector<64x16xbf16>, vector<64x16xf32> -> vector<64x16xf32>
    %90 = arith.addf %85, %89 : vector<64x16xf32>
    %c6_64 = arith.constant 6 : index
    %c0_65 = arith.constant 0 : index
    %c0_66 = arith.constant 0 : index
    %91 = vector.load %arg6[%c6_64, %c0_65, %c0_66] : memref<9x64x64xbf16, #tpu.memory_space<vmem>>, vector<1x64x64xbf16>
    %92 = vector.shape_cast %91 : vector<1x64x64xbf16> to vector<64x64xbf16>
    %93 = vector.extract_strided_slice %58 {offsets = [0, 96], sizes = [64, 16], strides = [1, 1]} : vector<64x144xbf16> to vector<64x16xbf16>
    %cst_67 = arith.constant dense<0.000000e+00> : vector<64x16xf32>
    %94 = tpu.matmul %92, %93, %cst_67 {dimension_numbers = #tpu.dot_dimension_numbers<[1], [0], [0], [1], [0, 0, 1, 1], [], []>} : vector<64x64xbf16>, vector<64x16xbf16>, vector<64x16xf32> -> vector<64x16xf32>
    %95 = arith.addf %90, %94 : vector<64x16xf32>
    %c7_68 = arith.constant 7 : index
    %c0_69 = arith.constant 0 : index
    %c0_70 = arith.constant 0 : index
    %96 = vector.load %arg6[%c7_68, %c0_69, %c0_70] : memref<9x64x64xbf16, #tpu.memory_space<vmem>>, vector<1x64x64xbf16>
    %97 = vector.shape_cast %96 : vector<1x64x64xbf16> to vector<64x64xbf16>
    %98 = vector.extract_strided_slice %58 {offsets = [0, 112], sizes = [64, 16], strides = [1, 1]} : vector<64x144xbf16> to vector<64x16xbf16>
    %cst_71 = arith.constant dense<0.000000e+00> : vector<64x16xf32>
    %99 = tpu.matmul %97, %98, %cst_71 {dimension_numbers = #tpu.dot_dimension_numbers<[1], [0], [0], [1], [0, 0, 1, 1], [], []>} : vector<64x64xbf16>, vector<64x16xbf16>, vector<64x16xf32> -> vector<64x16xf32>
    %100 = arith.addf %95, %99 : vector<64x16xf32>
    %c8_72 = arith.constant 8 : index
    %c0_73 = arith.constant 0 : index
    %c0_74 = arith.constant 0 : index
    %101 = vector.load %arg6[%c8_72, %c0_73, %c0_74] : memref<9x64x64xbf16, #tpu.memory_space<vmem>>, vector<1x64x64xbf16>
    %102 = vector.shape_cast %101 : vector<1x64x64xbf16> to vector<64x64xbf16>
    %103 = vector.extract_strided_slice %58 {offsets = [0, 128], sizes = [64, 16], strides = [1, 1]} : vector<64x144xbf16> to vector<64x16xbf16>
    %cst_75 = arith.constant dense<0.000000e+00> : vector<64x16xf32>
    %104 = tpu.matmul %102, %103, %cst_75 {dimension_numbers = #tpu.dot_dimension_numbers<[1], [0], [0], [1], [0, 0, 1, 1], [], []>} : vector<64x64xbf16>, vector<64x16xbf16>, vector<64x16xf32> -> vector<64x16xf32>
    %105 = arith.addf %100, %104 : vector<64x16xf32>
    %cst_76 = arith.constant 0.000000e+00 : f32
    %106 = vector.broadcast %cst_76 : f32 to vector<64x16xf32>
    %107 = arith.maximumf %105, %106 : vector<64x16xf32>
    %108 = arith.truncf %107 : vector<64x16xf32> to vector<64x16xbf16>
    %c0_77 = arith.constant 0 : index
    %c0_78 = arith.constant 0 : index
    %109 = vector.load %arg8[%c0_77, %c0_78] : memref<16x36xbf16, #tpu.memory_space<vmem>>, vector<16x36xbf16>
    %cst_79 = arith.constant dense<0.000000e+00> : vector<64x36xf32>
    %110 = tpu.matmul %108, %109, %cst_79 {dimension_numbers = #tpu.dot_dimension_numbers<[1], [0], [0], [1], [0, 0, 1, 1], [], []>} : vector<64x16xbf16>, vector<16x36xbf16>, vector<64x36xf32> -> vector<64x36xf32>
    %111 = arith.truncf %110 : vector<64x36xf32> to vector<64x36xbf16>
    %c0_80 = arith.constant 0 : index
    %c0_81 = arith.constant 0 : index
    %112 = vector.load %arg10[%c0_80, %c0_81] : memref<64x1xf32, #tpu.memory_space<vmem>>, vector<64x1xf32>
    %c0_82 = arith.constant 0 : index
    %c0_83 = arith.constant 0 : index
    %c0_84 = arith.constant 0 : index
    %113 = vector.load %arg9[%c0_82, %c0_83, %c0_84] : memref<9x64x64xbf16, #tpu.memory_space<vmem>>, vector<1x64x64xbf16>
    %114 = vector.shape_cast %113 : vector<1x64x64xbf16> to vector<64x64xbf16>
    %115 = vector.extract_strided_slice %111 {offsets = [0, 0], sizes = [64, 4], strides = [1, 1]} : vector<64x36xbf16> to vector<64x4xbf16>
    %cst_85 = arith.constant dense<0.000000e+00> : vector<64x4xf32>
    %116 = tpu.matmul %114, %115, %cst_85 {dimension_numbers = #tpu.dot_dimension_numbers<[1], [0], [0], [1], [0, 0, 1, 1], [], []>} : vector<64x64xbf16>, vector<64x4xbf16>, vector<64x4xf32> -> vector<64x4xf32>
    %117 = vector.broadcast %112 : vector<64x1xf32> to vector<64x4xf32>
    %118 = arith.addf %117, %116 : vector<64x4xf32>
    %c1_86 = arith.constant 1 : index
    %c0_87 = arith.constant 0 : index
    %c0_88 = arith.constant 0 : index
    %119 = vector.load %arg9[%c1_86, %c0_87, %c0_88] : memref<9x64x64xbf16, #tpu.memory_space<vmem>>, vector<1x64x64xbf16>
    %120 = vector.shape_cast %119 : vector<1x64x64xbf16> to vector<64x64xbf16>
    %121 = vector.extract_strided_slice %111 {offsets = [0, 4], sizes = [64, 4], strides = [1, 1]} : vector<64x36xbf16> to vector<64x4xbf16>
    %cst_89 = arith.constant dense<0.000000e+00> : vector<64x4xf32>
    %122 = tpu.matmul %120, %121, %cst_89 {dimension_numbers = #tpu.dot_dimension_numbers<[1], [0], [0], [1], [0, 0, 1, 1], [], []>} : vector<64x64xbf16>, vector<64x4xbf16>, vector<64x4xf32> -> vector<64x4xf32>
    %123 = arith.addf %118, %122 : vector<64x4xf32>
    %c2_90 = arith.constant 2 : index
    %c0_91 = arith.constant 0 : index
    %c0_92 = arith.constant 0 : index
    %124 = vector.load %arg9[%c2_90, %c0_91, %c0_92] : memref<9x64x64xbf16, #tpu.memory_space<vmem>>, vector<1x64x64xbf16>
    %125 = vector.shape_cast %124 : vector<1x64x64xbf16> to vector<64x64xbf16>
    %126 = vector.extract_strided_slice %111 {offsets = [0, 8], sizes = [64, 4], strides = [1, 1]} : vector<64x36xbf16> to vector<64x4xbf16>
    %cst_93 = arith.constant dense<0.000000e+00> : vector<64x4xf32>
    %127 = tpu.matmul %125, %126, %cst_93 {dimension_numbers = #tpu.dot_dimension_numbers<[1], [0], [0], [1], [0, 0, 1, 1], [], []>} : vector<64x64xbf16>, vector<64x4xbf16>, vector<64x4xf32> -> vector<64x4xf32>
    %128 = arith.addf %123, %127 : vector<64x4xf32>
    %c3_94 = arith.constant 3 : index
    %c0_95 = arith.constant 0 : index
    %c0_96 = arith.constant 0 : index
    %129 = vector.load %arg9[%c3_94, %c0_95, %c0_96] : memref<9x64x64xbf16, #tpu.memory_space<vmem>>, vector<1x64x64xbf16>
    %130 = vector.shape_cast %129 : vector<1x64x64xbf16> to vector<64x64xbf16>
    %131 = vector.extract_strided_slice %111 {offsets = [0, 12], sizes = [64, 4], strides = [1, 1]} : vector<64x36xbf16> to vector<64x4xbf16>
    %cst_97 = arith.constant dense<0.000000e+00> : vector<64x4xf32>
    %132 = tpu.matmul %130, %131, %cst_97 {dimension_numbers = #tpu.dot_dimension_numbers<[1], [0], [0], [1], [0, 0, 1, 1], [], []>} : vector<64x64xbf16>, vector<64x4xbf16>, vector<64x4xf32> -> vector<64x4xf32>
    %133 = arith.addf %128, %132 : vector<64x4xf32>
    %c4_98 = arith.constant 4 : index
    %c0_99 = arith.constant 0 : index
    %c0_100 = arith.constant 0 : index
    %134 = vector.load %arg9[%c4_98, %c0_99, %c0_100] : memref<9x64x64xbf16, #tpu.memory_space<vmem>>, vector<1x64x64xbf16>
    %135 = vector.shape_cast %134 : vector<1x64x64xbf16> to vector<64x64xbf16>
    %136 = vector.extract_strided_slice %111 {offsets = [0, 16], sizes = [64, 4], strides = [1, 1]} : vector<64x36xbf16> to vector<64x4xbf16>
    %cst_101 = arith.constant dense<0.000000e+00> : vector<64x4xf32>
    %137 = tpu.matmul %135, %136, %cst_101 {dimension_numbers = #tpu.dot_dimension_numbers<[1], [0], [0], [1], [0, 0, 1, 1], [], []>} : vector<64x64xbf16>, vector<64x4xbf16>, vector<64x4xf32> -> vector<64x4xf32>
    %138 = arith.addf %133, %137 : vector<64x4xf32>
    %c5_102 = arith.constant 5 : index
    %c0_103 = arith.constant 0 : index
    %c0_104 = arith.constant 0 : index
    %139 = vector.load %arg9[%c5_102, %c0_103, %c0_104] : memref<9x64x64xbf16, #tpu.memory_space<vmem>>, vector<1x64x64xbf16>
    %140 = vector.shape_cast %139 : vector<1x64x64xbf16> to vector<64x64xbf16>
    %141 = vector.extract_strided_slice %111 {offsets = [0, 20], sizes = [64, 4], strides = [1, 1]} : vector<64x36xbf16> to vector<64x4xbf16>
    %cst_105 = arith.constant dense<0.000000e+00> : vector<64x4xf32>
    %142 = tpu.matmul %140, %141, %cst_105 {dimension_numbers = #tpu.dot_dimension_numbers<[1], [0], [0], [1], [0, 0, 1, 1], [], []>} : vector<64x64xbf16>, vector<64x4xbf16>, vector<64x4xf32> -> vector<64x4xf32>
    %143 = arith.addf %138, %142 : vector<64x4xf32>
    %c6_106 = arith.constant 6 : index
    %c0_107 = arith.constant 0 : index
    %c0_108 = arith.constant 0 : index
    %144 = vector.load %arg9[%c6_106, %c0_107, %c0_108] : memref<9x64x64xbf16, #tpu.memory_space<vmem>>, vector<1x64x64xbf16>
    %145 = vector.shape_cast %144 : vector<1x64x64xbf16> to vector<64x64xbf16>
    %146 = vector.extract_strided_slice %111 {offsets = [0, 24], sizes = [64, 4], strides = [1, 1]} : vector<64x36xbf16> to vector<64x4xbf16>
    %cst_109 = arith.constant dense<0.000000e+00> : vector<64x4xf32>
    %147 = tpu.matmul %145, %146, %cst_109 {dimension_numbers = #tpu.dot_dimension_numbers<[1], [0], [0], [1], [0, 0, 1, 1], [], []>} : vector<64x64xbf16>, vector<64x4xbf16>, vector<64x4xf32> -> vector<64x4xf32>
    %148 = arith.addf %143, %147 : vector<64x4xf32>
    %c7_110 = arith.constant 7 : index
    %c0_111 = arith.constant 0 : index
    %c0_112 = arith.constant 0 : index
    %149 = vector.load %arg9[%c7_110, %c0_111, %c0_112] : memref<9x64x64xbf16, #tpu.memory_space<vmem>>, vector<1x64x64xbf16>
    %150 = vector.shape_cast %149 : vector<1x64x64xbf16> to vector<64x64xbf16>
    %151 = vector.extract_strided_slice %111 {offsets = [0, 28], sizes = [64, 4], strides = [1, 1]} : vector<64x36xbf16> to vector<64x4xbf16>
    %cst_113 = arith.constant dense<0.000000e+00> : vector<64x4xf32>
    %152 = tpu.matmul %150, %151, %cst_113 {dimension_numbers = #tpu.dot_dimension_numbers<[1], [0], [0], [1], [0, 0, 1, 1], [], []>} : vector<64x64xbf16>, vector<64x4xbf16>, vector<64x4xf32> -> vector<64x4xf32>
    %153 = arith.addf %148, %152 : vector<64x4xf32>
    %c8_114 = arith.constant 8 : index
    %c0_115 = arith.constant 0 : index
    %c0_116 = arith.constant 0 : index
    %154 = vector.load %arg9[%c8_114, %c0_115, %c0_116] : memref<9x64x64xbf16, #tpu.memory_space<vmem>>, vector<1x64x64xbf16>
    %155 = vector.shape_cast %154 : vector<1x64x64xbf16> to vector<64x64xbf16>
    %156 = vector.extract_strided_slice %111 {offsets = [0, 32], sizes = [64, 4], strides = [1, 1]} : vector<64x36xbf16> to vector<64x4xbf16>
    %cst_117 = arith.constant dense<0.000000e+00> : vector<64x4xf32>
    %157 = tpu.matmul %155, %156, %cst_117 {dimension_numbers = #tpu.dot_dimension_numbers<[1], [0], [0], [1], [0, 0, 1, 1], [], []>} : vector<64x64xbf16>, vector<64x4xbf16>, vector<64x4xf32> -> vector<64x4xf32>
    %158 = arith.addf %153, %157 : vector<64x4xf32>
    %cst_118 = arith.constant 0.000000e+00 : f32
    %159 = vector.broadcast %cst_118 : f32 to vector<64x4xf32>
    %160 = arith.maximumf %158, %159 : vector<64x4xf32>
    %c0_119 = arith.constant 0 : index
    %c0_120 = arith.constant 0 : index
    %161 = vector.load %arg11[%c0_119, %c0_120] : memref<64x1xf32, #tpu.memory_space<vmem>>, vector<64x1xf32>
    %162 = vector.broadcast %161 : vector<64x1xf32> to vector<64x4xf32>
    %163 = arith.mulf %160, %162 : vector<64x4xf32>
    %c0_121 = arith.constant 0 : index
    %c0_122 = arith.constant 0 : index
    %164 = vector.load %arg12[%c0_121, %c0_122] : memref<64x1xf32, #tpu.memory_space<vmem>>, vector<64x1xf32>
    %165 = vector.broadcast %164 : vector<64x1xf32> to vector<64x4xf32>
    %166 = arith.addf %163, %165 : vector<64x4xf32>
    %cst_123 = arith.constant 0.000000e+00 : f32
    %167 = vector.broadcast %cst_123 : f32 to vector<64x4xf32>
    %168 = arith.maximumf %166, %167 : vector<64x4xf32>
    %cst_124 = arith.constant dense<0.000000e+00> : vector<64xf32>
    %169 = vector.multi_reduction <add>, %168, %cst_124 [1] : vector<64x4xf32> to vector<64xf32>
    %170 = vector.shape_cast %169 : vector<64xf32> to vector<64x1xf32>
    %c0_125 = arith.constant 0 : index
    %c0_126 = arith.constant 0 : index
    %171 = vector.load %arg13[%c0_125, %c0_126] : memref<64x128xf32, #tpu.memory_space<vmem>>, vector<64x128xf32>
    %172 = vector.broadcast %170 : vector<64x1xf32> to vector<64x128xf32>
    %173 = arith.mulf %172, %171 : vector<64x128xf32>
    %c0_127 = arith.constant 0 : index
    %c0_128 = arith.constant 0 : index
    %174 = vector.load %arg14[%c0_127, %c0_128] : memref<8x64xf32, #tpu.memory_space<vmem>>, vector<8x64xf32>
    %cst_129 = arith.constant dense<0.000000e+00> : vector<8x128xf32>
    %175 = tpu.matmul %174, %173, %cst_129 {dimension_numbers = #tpu.dot_dimension_numbers<[1], [0], [0], [1], [0, 0, 1, 1], [], []>} : vector<8x64xf32>, vector<64x128xf32>, vector<8x128xf32> -> vector<8x128xf32>
    %c0_130 = arith.constant 0 : index
    %c0_131 = arith.constant 0 : index
    %176 = vector.load %arg15[%c0_130, %c0_131] : memref<1x128xf32, #tpu.memory_space<vmem>>, vector<1x128xf32>
    %177 = vector.broadcast %176 : vector<1x128xf32> to vector<8x128xf32>
    %178 = arith.addf %175, %177 : vector<8x128xf32>
    %c0_132 = arith.constant 0 : index
    %c0_133 = arith.constant 0 : index
    %179 = vector.load %arg16[%c0_132, %c0_133] : memref<8x128xf32, #tpu.memory_space<vmem>>, vector<8x128xf32>
    tpu.vector_store %arg16[%c0_132, %c0_133], %178 {strides = array<i32>} : memref<8x128xf32, #tpu.memory_space<vmem>>, vector<8x128xf32>,
    return
  }
  func.func @transform_0(%arg0: i32) -> (i32, i32, i32) {
    %c0_i32 = arith.constant 0 : i32
    %c0_i32_0 = arith.constant 0 : i32
    %c0_i32_1 = arith.constant 0 : i32
    return %arg0, %c0_i32, %c0_i32_0 : i32, i32, i32
  }
  func.func @transform_1(%arg0: i32) -> (i32, i32) {
    %c0_i32 = arith.constant 0 : i32
    %c0_i32_0 = arith.constant 0 : i32
    %c0_i32_1 = arith.constant 0 : i32
    return %c0_i32, %c0_i32_0 : i32, i32
  }
  func.func @transform_2(%arg0: i32) -> (i32, i32, i32) {
    %c0_i32 = arith.constant 0 : i32
    %c0_i32_0 = arith.constant 0 : i32
    %c0_i32_1 = arith.constant 0 : i32
    %c0_i32_2 = arith.constant 0 : i32
    return %c0_i32, %c0_i32_0, %c0_i32_1 : i32, i32, i32
  }
  func.func @transform_3(%arg0: i32) -> (i32, i32) {
    %c0_i32 = arith.constant 0 : i32
    %c0_i32_0 = arith.constant 0 : i32
    %c0_i32_1 = arith.constant 0 : i32
    return %c0_i32, %c0_i32_0 : i32, i32
  }
  func.func @transform_4(%arg0: i32) -> (i32, i32) {
    %c0_i32 = arith.constant 0 : i32
    %c0_i32_0 = arith.constant 0 : i32
    %c0_i32_1 = arith.constant 0 : i32
    return %c0_i32, %c0_i32_0 : i32, i32
  }
  func.func @transform_5(%arg0: i32) -> (i32, i32, i32) {
    %c0_i32 = arith.constant 0 : i32
    %c0_i32_0 = arith.constant 0 : i32
    %c0_i32_1 = arith.constant 0 : i32
    %c0_i32_2 = arith.constant 0 : i32
    return %c0_i32, %c0_i32_0, %c0_i32_1 : i32, i32, i32
  }
  func.func @transform_6(%arg0: i32) -> (i32, i32) {
    %c0_i32 = arith.constant 0 : i32
    %c0_i32_0 = arith.constant 0 : i32
    %c0_i32_1 = arith.constant 0 : i32
    return %c0_i32, %c0_i32_0 : i32, i32
  }
  func.func @transform_7(%arg0: i32) -> (i32, i32) {
    %c0_i32 = arith.constant 0 : i32
    %c0_i32_0 = arith.constant 0 : i32
    %c0_i32_1 = arith.constant 0 : i32
    return %c0_i32, %c0_i32_0 : i32, i32
  }
  func.func @transform_8(%arg0: i32) -> (i32, i32, i32) {
    %c0_i32 = arith.constant 0 : i32
    %c0_i32_0 = arith.constant 0 : i32
    %c0_i32_1 = arith.constant 0 : i32
    %c0_i32_2 = arith.constant 0 : i32
    return %c0_i32, %c0_i32_0, %c0_i32_1 : i32, i32, i32
  }
  func.func @transform_9(%arg0: i32) -> (i32, i32) {
    %c0_i32 = arith.constant 0 : i32
    %c0_i32_0 = arith.constant 0 : i32
    %c0_i32_1 = arith.constant 0 : i32
    return %c0_i32, %c0_i32_0 : i32, i32
  }
  func.func @transform_10(%arg0: i32) -> (i32, i32) {
    %c0_i32 = arith.constant 0 : i32
    %c0_i32_0 = arith.constant 0 : i32
    %c0_i32_1 = arith.constant 0 : i32
    return %c0_i32, %c0_i32_0 : i32, i32
  }
  func.func @transform_11(%arg0: i32) -> (i32, i32) {
    %c0_i32 = arith.constant 0 : i32
    %c0_i32_0 = arith.constant 0 : i32
    %c0_i32_1 = arith.constant 0 : i32
    return %c0_i32, %c0_i32_0 : i32, i32
  }
  func.func @transform_12(%arg0: i32) -> (i32, i32) {
    %c0_i32 = arith.constant 0 : i32
    %c0_i32_0 = arith.constant 0 : i32
    %c0_i32_1 = arith.constant 0 : i32
    return %c0_i32, %c0_i32_0 : i32, i32
  }
  func.func @transform_13(%arg0: i32) -> (i32, i32) {
    %c0_i32 = arith.constant 0 : i32
    %c0_i32_0 = arith.constant 0 : i32
    %c0_i32_1 = arith.constant 0 : i32
    return %c0_i32, %c0_i32_0 : i32, i32
  }
  func.func @transform_14(%arg0: i32) -> (i32, i32) {
    %c0_i32 = arith.constant 0 : i32
    %c0_i32_0 = arith.constant 0 : i32
    %c0_i32_1 = arith.constant 0 : i32
    return %c0_i32, %c0_i32_0 : i32, i32
  }
  func.func @transform_15(%arg0: i32) -> (i32, i32) {
    %c0_i32 = arith.constant 0 : i32
    %c0_i32_0 = arith.constant 0 : i32
    return %arg0, %c0_i32 : i32, i32
  }
}

</mosaic_0001>

<bundles_post_ra>
// kernel: tpu_custom_call.1
= control target key start
LH: loop header
LB: loop body
LE: loop exit
PB: predicated region body
PF: predicated region fallthrough
CT: control target
= control target key end

     0   :  { %s7763_s0 = inlined_call_operand.vmem [shape: f32[8,8,256], index: 0, kind: input, shape index: {}]   ;;  %s7764_s1 = inlined_call_operand.vmem [shape: bf16[256,576], index: 1, kind: input, shape index: {}]   ;;  %s7765_s2 = inlined_call_operand.vmem [shape: bf16[9,64,64], index: 2, kind: input, shape index: {}]   ;;  %s7766_s3 = inlined_call_operand.vmem [shape: f32[64,1], index: 3, kind: input, shape index: {}]   ;;  %s7767_s4 = inlined_call_operand.vmem [shape: bf16[64,144], index: 4, kind: input, shape index: {}]   ;;  %s7768_s5 = inlined_call_operand.vmem [shape: bf16[9,64,64], index: 5, kind: input, shape index: {}]   ;;  %s7769_s6 = inlined_call_operand.vmem [shape: f32[64,1], index: 6, kind: input, shape index: {}]   ;;  %s7770_s7 = inlined_call_operand.vmem [shape: bf16[16,36], index: 7, kind: input, shape index: {}]   ;;  %s7771_s8 = inlined_call_operand.vmem [shape: bf16[9,64,64], index: 8, kind: input, shape index: {}]   ;;  %s7772_s9 = inlined_call_operand.vmem [shape: f32[64,1], index: 9, kind: input, shape index: {}]   ;;  %s7773_s10 = inlined_call_operand.vmem [shape: f32[64,1], index: 10, kind: input, shape index: {}]   ;;  %s7774_s11 = inlined_call_operand.vmem [shape: f32[64,1], index: 11, kind: input, shape index: {}]   ;;  %s7775_s12 = inlined_call_operand.vmem [shape: f32[64,128], index: 12, kind: input, shape index: {}]   ;;  %s7776_s13 = inlined_call_operand.vmem [shape: f32[8,64], index: 13, kind: input, shape index: {}]   ;;  %s7777_s14 = inlined_call_operand.vmem [shape: f32[1,128], index: 14, kind: input, shape index: {}]   ;;  %s7778_s15 = inlined_call_operand.hbm [shape: f32[8,128], index: 15, kind: output, shape index: {}]  }
   0x1   :  { %v6297_v0 = vld [vmem:[%s7764_s1 + $0x4] ss:$20 sps:$4 sm:$0xff]   ;;  %v6299_v1 = vld [vmem:[%s7764_s1] ss:$20 sps:$4 sm:$0xff]   ;;  %v6302_v3 = vld [vmem:[%s7764_s1 + $0x28] ss:$20 sps:$4 sm:$0xff]  }
   0x2   :  { %588 = vmatprep.subr.bf16.mxu0 %v6297_v0  ;;  %v6300_v2 = vld [vmem:[%s7764_s1 + $0x2c] ss:$20 sps:$4 sm:$0xff]   ;;  %v6303_v4 = vld [vmem:[%s7764_s1 + $0x54] ss:$20 sps:$4 sm:$0xff]   ;;  %v6305_v5 = vld [vmem:[%s7764_s1 + $0x50] ss:$20 sps:$4 sm:$0xff]  }
   0x3   :  { %589 = vmatpush1.bf16.msra.mxu0 %v6299_v1  ;;  %v6306_v6 = vld [vmem:[%s7764_s1 + $0x7c] ss:$20 sps:$4 sm:$0xff]   ;;  %v6308_v7 = vld [vmem:[%s7764_s1 + $0x78] ss:$20 sps:$4 sm:$0xff]   ;;  %v6311_v9 = vld [vmem:[%s7764_s1 + $0xa0] ss:$20 sps:$4 sm:$0xff]  }
   0x4   :  { %590 = vmatprep.subr.bf16.mxu0 %v6300_v2  ;;  %v6309_v8 = vld [vmem:[%s7764_s1 + $0xa4] ss:$20 sps:$4 sm:$0xff]   ;;  %v6312_v10 = vld [vmem:[%s7764_s1 + $0xcc] ss:$20 sps:$4 sm:$0xff]   ;;  %v6314_v11 = vld [vmem:[%s7764_s1 + $0xc8] ss:$20 sps:$4 sm:$0xff]  }
   0x5   :  { %v6315_v12 = vld [vmem:[%s7764_s1 + $0xf4] ss:$20 sps:$4 sm:$0xff]   ;;  %v55_v14 = vld [vmem:[%s7763_s0 + $0x18] sm:$0xff]  ;;  %v6317_v16 = vld [vmem:[%s7764_s1 + $0xf0] ss:$20 sps:$4 sm:$0xff]  }
   0x6   :  { %v53_v13 = vld [vmem:[%s7763_s0 + $0x8] sm:$0xff]  ;;  %v6318_v17 = vld [vmem:[%s7764_s1 + $0x11c] ss:$20 sps:$4 sm:$0xff]   ;;  %v6321_v19 = vld [vmem:[%s7764_s1 + $0x144] ss:$20 sps:$4 sm:$0xff]  }
   0x7   :  { %591 = vmatpush1.bf16.msra.mxu0 %v6302_v3  ;;  %v6697_v15 = vpack.c.bf16 %v55_v14, %v53_v13  ;;  %v6320_v18 = vld [vmem:[%s7764_s1 + $0x118] ss:$20 sps:$4 sm:$0xff]   ;;  %v6323_v20 = vld [vmem:[%s7764_s1 + $0x140] ss:$20 sps:$4 sm:$0xff]   ;;  %v6326_v22 = vld [vmem:[%s7764_s1 + $0x168] ss:$20 sps:$4 sm:$0xff]  }
   0x8   :  { %592 = vmatprep.subr.bf16.mxu0 %v6303_v4  ;;  %v6324_v21 = vld [vmem:[%s7764_s1 + $0x16c] ss:$20 sps:$4 sm:$0xff]   ;;  %v6327_v23 = vld [vmem:[%s7764_s1 + $0x194] ss:$20 sps:$4 sm:$0xff]   ;;  %v6329_v24 = vld [vmem:[%s7764_s1 + $0x190] ss:$20 sps:$4 sm:$0xff]  }
   0x9   :  { %620 = vmatprep.mubr.bf16.mxu0 %v6697_v15  ;;  %v6330_v25 = vld [vmem:[%s7764_s1 + $0x1bc] ss:$20 sps:$4 sm:$0xff]   ;;  %v6332_v26 = vld [vmem:[%s7764_s1 + $0x1b8] ss:$20 sps:$4 sm:$0xff]   ;;  %v6335_v28 = vld [vmem:[%s7764_s1 + $0x1e0] ss:$20 sps:$4 sm:$0xff]  }
   0xa   :  { %v6333_v27 = vld [vmem:[%s7764_s1 + $0x1e4] ss:$20 sps:$4 sm:$0xff]   ;;  %v6336_v29 = vld [vmem:[%s7764_s1 + $0x20c] ss:$20 sps:$4 sm:$0xff]   ;;  %v6338_v30 = vld [vmem:[%s7764_s1 + $0x208] ss:$20 sps:$4 sm:$0xff]  }
   0xb   :  { %593 = vmatpush1.bf16.msra.mxu0 %v6305_v5  ;;  %v6339_v31 = vld [vmem:[%s7764_s1 + $0x234] ss:$20 sps:$4 sm:$0xff]   ;;  %v6341_v32 = vld [vmem:[%s7764_s1 + $0x230] ss:$20 sps:$4 sm:$0xff]   ;;  %v6344_v34 = vld [vmem:[%s7764_s1 + $0x258] ss:$20 sps:$4 sm:$0xff]  }
   0xc   :  { %594 = vmatprep.subr.bf16.mxu0 %v6306_v6  ;;  %v6342_v33 = vld [vmem:[%s7764_s1 + $0x25c] ss:$20 sps:$4 sm:$0xff]   ;;  %v52_v35 = vld [vmem:[%s7763_s0] sm:$0xff]  ;;  %v57_v38 = vld [vmem:[%s7763_s0 + $0x28] sm:$0xff] }
   0xd   :  { %v54_v36 = vld [vmem:[%s7763_s0 + $0x10] sm:$0xff]  ;;  %v6347_v37 = vld [vmem:[%s7764_s1 + $0xc] ss:$20 sps:$4 sm:$0xff]   ;;  %v59_v39 = vld [vmem:[%s7763_s0 + $0x38] sm:$0xff] }
   0xe   :  { %v6345_v40 = vld [vmem:[%s7764_s1 + $0x8] ss:$20 sps:$4 sm:$0xff]   ;;  %v6775_v41 = vpack.c.bf16 %v54_v36, %v52_v35  ;;  %v6780_v43 = vpack.c.bf16 %v59_v39, %v57_v38  ;;  %v6348_v44 = vld [vmem:[%s7764_s1 + $0x30] ss:$20 sps:$4 sm:$0xff]   ;;  %v6351_v50 = vld [vmem:[%s7764_s1 + $0x58] ss:$20 sps:$4 sm:$0xff]  }
   0xf   :  { %595 = vmatpush1.bf16.msra.mxu0 %v6308_v7  ;;  %v6350_v42 = vld [vmem:[%s7764_s1 + $0x34] ss:$20 sps:$4 sm:$0xff]   ;;  %v56_v45 = vld [vmem:[%s7763_s0 + $0x20] sm:$0xff]  ;;  %v6353_v47 = vld [vmem:[%s7764_s1 + $0x5c] ss:$20 sps:$4 sm:$0xff]  }
  0x10   :  { %596 = vmatprep.subr.bf16.mxu0 %v6309_v8  ;;  %v58_v46 = vld [vmem:[%s7763_s0 + $0x30] sm:$0xff]  ;;  %v61_v48 = vld [vmem:[%s7763_s0 + $0x48] sm:$0xff]  ;;  %v63_v49 = vld [vmem:[%s7763_s0 + $0x58] sm:$0xff] }
  0x11   :  { %v6805_v51 = vpack.c.bf16 %v58_v46, %v56_v45  ;;  %v6356_v52 = vld [vmem:[%s7764_s1 + $0x84] ss:$20 sps:$4 sm:$0xff]   ;;  %v6810_v53 = vpack.c.bf16 %v63_v49, %v61_v48  ;;  %v6354_v54 = vld [vmem:[%s7764_s1 + $0x80] ss:$20 sps:$4 sm:$0xff]   ;;  %v65_v58 = vld [vmem:[%s7763_s0 + $0x68] sm:$0xff] }
  0x12   :  { %v60_v55 = vld [vmem:[%s7763_s0 + $0x40] sm:$0xff]  ;;  %v62_v56 = vld [vmem:[%s7763_s0 + $0x50] sm:$0xff]  ;;  %v67_v59 = vld [vmem:[%s7763_s0 + $0x78] sm:$0xff] }
  0x13   :  { %597 = vmatpush1.bf16.msra.mxu0 %v6311_v9  ;;  %v6359_v57 = vld [vmem:[%s7764_s1 + $0xac] ss:$20 sps:$4 sm:$0xff]   ;;  %v6357_v60 = vld [vmem:[%s7764_s1 + $0xa8] ss:$20 sps:$4 sm:$0xff]   ;;  %v6835_v61 = vpack.c.bf16 %v62_v56, %v60_v55  ;;  %v6840_v63 = vpack.c.bf16 %v67_v59, %v65_v58  ;;  %v6360_v0 = vld [vmem:[%s7764_s1 + $0xd0] ss:$20 sps:$4 sm:$0xff]  }
  0x14   :  { %598 = vmatprep.subr.bf16.mxu0 %v6312_v10  ;;  %v6362_v62 = vld [vmem:[%s7764_s1 + $0xd4] ss:$20 sps:$4 sm:$0xff]   ;;  %v64_v1 = vld [vmem:[%s7763_s0 + $0x60] sm:$0xff]  ;;  %v6365_v3 = vld [vmem:[%s7764_s1 + $0xfc] ss:$20 sps:$4 sm:$0xff]  }
  0x15   :  { %v66_v2 = vld [vmem:[%s7763_s0 + $0x70] sm:$0xff]  ;;  %v6363_v4 = vld [vmem:[%s7764_s1 + $0xf8] ss:$20 sps:$4 sm:$0xff]   ;;  %v6369_v9 = vld [vmem:[%s7764_s1 + $0x148] ss:$20 sps:$4 sm:$0xff]  }
  0x16   :  { %v6859_v5 = vpack.c.bf16 %v66_v2, %v64_v1  ;;  %v6368_v6 = vld [vmem:[%s7764_s1 + $0x124] ss:$20 sps:$4 sm:$0xff]   ;;  %v6366_v7 = vld [vmem:[%s7764_s1 + $0x120] ss:$20 sps:$4 sm:$0xff]  }
  0x17   :  { %599 = vmatpush1.bf16.msra.mxu0 %v6314_v11  ;;  %v6371_v8 = vld [vmem:[%s7764_s1 + $0x14c] ss:$20 sps:$4 sm:$0xff]   ;;  %v6374_v10 = vld [vmem:[%s7764_s1 + $0x174] ss:$20 sps:$4 sm:$0xff]   ;;  %v6372_v11 = vld [vmem:[%s7764_s1 + $0x170] ss:$20 sps:$4 sm:$0xff]  }
  0x18   :  { %600 = vmatprep.subr.bf16.mxu0 %v6315_v12  ;;  %v6377_v12 = vld [vmem:[%s7764_s1 + $0x19c] ss:$20 sps:$4 sm:$0xff]   ;;  %v6375_v13 = vld [vmem:[%s7764_s1 + $0x198] ss:$20 sps:$4 sm:$0xff]  }
  0x19   :  { %v6380_v14 = vld [vmem:[%s7764_s1 + $0x1c4] ss:$20 sps:$4 sm:$0xff]  }
  0x1b   :  { %601 = vmatpush1.bf16.msra.mxu0 %v6317_v16  ;;  %v6378_v16 = vld [vmem:[%s7764_s1 + $0x1c0] ss:$20 sps:$4 sm:$0xff]  }
  0x1c   :  { %602 = vmatprep.subr.bf16.mxu0 %v6318_v17  ;;  %v6383_v17 = vld [vmem:[%s7764_s1 + $0x1ec] ss:$20 sps:$4 sm:$0xff]  }
  0x1f   :  { %603 = vmatpush1.bf16.msra.mxu0 %v6320_v18  ;;  %v6381_v18 = vld [vmem:[%s7764_s1 + $0x1e8] ss:$20 sps:$4 sm:$0xff]  }
  0x20   :  { %604 = vmatprep.subr.bf16.mxu0 %v6321_v19  ;;  %v6386_v19 = vld [vmem:[%s7764_s1 + $0x214] ss:$20 sps:$4 sm:$0xff]  }
  0x23   :  { %605 = vmatpush1.bf16.msra.mxu0 %v6323_v20  ;;  %v6384_v20 = vld [vmem:[%s7764_s1 + $0x210] ss:$20 sps:$4 sm:$0xff]  }
  0x24   :  { %606 = vmatprep.subr.bf16.mxu0 %v6324_v21  ;;  %v6389_v21 = vld [vmem:[%s7764_s1 + $0x23c] ss:$20 sps:$4 sm:$0xff]  }
  0x27   :  { %607 = vmatpush1.bf16.msra.mxu0 %v6326_v22  ;;  %v6387_v22 = vld [vmem:[%s7764_s1 + $0x238] ss:$20 sps:$4 sm:$0xff]  }
  0x28   :  { %608 = vmatprep.subr.bf16.mxu0 %v6327_v23  ;;  %v6392_v23 = vld [vmem:[%s7764_s1 + $0x264] ss:$20 sps:$4 sm:$0xff]  }
  0x2b   :  { %609 = vmatpush1.bf16.msra.mxu0 %v6329_v24  ;;  %v6390_v24 = vld [vmem:[%s7764_s1 + $0x260] ss:$20 sps:$4 sm:$0xff]  }
  0x2c   :  { %610 = vmatprep.subr.bf16.mxu0 %v6330_v25  ;;  %v6393_v25 = vld [vmem:[%s7764_s1 + $0x150] ss:$20 sps:$4 sm:$0xff]  }
  0x2f   :  { %611 = vmatpush1.bf16.msra.mxu0 %v6332_v26  ;;  %v6394_v26 = vld [vmem:[%s7764_s1 + $0x10] ss:$20 sps:$4 sm:$0xff]  }
  0x30   :  { %612 = vmatprep.subr.bf16.mxu0 %v6333_v27  ;;  %v6395_v27 = vld [vmem:[%s7764_s1 + $0x178] ss:$20 sps:$4 sm:$0xff]  }
  0x33   :  { %613 = vmatpush1.bf16.msra.mxu0 %v6335_v28  ;;  %v6396_v28 = vld [vmem:[%s7764_s1 + $0x38] ss:$20 sps:$4 sm:$0xff]  }
  0x34   :  { %614 = vmatprep.subr.bf16.mxu0 %v6336_v29  ;;  %v6397_v29 = vld [vmem:[%s7764_s1 + $0x1a0] ss:$20 sps:$4 sm:$0xff]  }
  0x37   :  { %615 = vmatpush1.bf16.msra.mxu0 %v6338_v30  ;;  %v6398_v30 = vld [vmem:[%s7764_s1 + $0x60] ss:$20 sps:$4 sm:$0xff]  }
  0x38   :  { %616 = vmatprep.subr.bf16.mxu0 %v6339_v31  ;;  %v6399_v31 = vld [vmem:[%s7764_s1 + $0x1c8] ss:$20 sps:$4 sm:$0xff]  }
  0x3b   :  { %617 = vmatpush1.bf16.msra.mxu0 %v6341_v32 }
  0x3c   :  { %618 = vmatprep.subr.bf16.mxu0 %v6342_v33 }
  0x3f   :  { %619 = vmatpush1.bf16.msra.mxu0 %v6344_v34 }
  0x40   :  { %661 = vmatprep.subr.bf16.mxu0 %v6347_v37 }
  0x42   :  { %621 = vmatmul.mubr.bf16.vlgmr.msra.gmra.mrb[0].mxu0 %v6775_v41 }
  0x43   :  { %662 = vmatpush1.bf16.msra.mxu0 %v6345_v40  ;;  %630 = vmatprep.mubr.bf16.mxu0 %v6780_v43 }
  0x44   :  { %663 = vmatprep.subr.bf16.mxu0 %v6350_v42 }
  0x47   :  { %664 = vmatpush1.bf16.msra.mxu0 %v6348_v44 }
  0x48   :  { %665 = vmatprep.subr.bf16.mxu0 %v6353_v47 }
  0x4a   :  { %631 = vmatmul.mubr.bf16.gmra.mrb[4].mxu0 %v6805_v51 }
  0x4b   :  { %666 = vmatpush1.bf16.msra.mxu0 %v6351_v50  ;;  %640 = vmatprep.mubr.bf16.mxu0 %v6810_v53 }
  0x4c   :  { %667 = vmatprep.subr.bf16.mxu0 %v6356_v52 }
  0x4f   :  { %668 = vmatpush1.bf16.msra.mxu0 %v6354_v54 }
  0x50   :  { %669 = vmatprep.subr.bf16.mxu0 %v6359_v57 }
  0x52   :  { %641 = vmatmul.mubr.bf16.gmra.mrb[8].mxu0 %v6835_v61 }
  0x53   :  { %670 = vmatpush1.bf16.msra.mxu0 %v6357_v60  ;;  %650 = vmatprep.mubr.bf16.mxu0 %v6840_v63 }
  0x54   :  { %671 = vmatprep.subr.bf16.mxu0 %v6362_v62 }
  0x57   :  { %672 = vmatpush1.bf16.msra.mxu0 %v6360_v0 }
  0x58   :  { %673 = vmatprep.subr.bf16.mxu0 %v6365_v3 }
  0x5a   :  { %651 = vmatmul.mubr.bf16.gmra.mrb[12].mxu0 %v6859_v5 }
  0x5b   :  { %674 = vmatpush1.bf16.msra.mxu0 %v6363_v4  ;;  %693 = vmatprep.mubr.bf16.mxu0 %v6697_v15 }
  0x5c   :  { %675 = vmatprep.subr.bf16.mxu0 %v6368_v6 }
  0x5f   :  { %676 = vmatpush1.bf16.msra.mxu0 %v6366_v7 }
  0x60   :  { %677 = vmatprep.subr.bf16.mxu0 %v6371_v8 }
  0x63   :  { %678 = vmatpush1.bf16.msra.mxu0 %v6369_v9 }
  0x64   :  { %679 = vmatprep.subr.bf16.mxu0 %v6374_v10 }
  0x67   :  { %680 = vmatpush1.bf16.msra.mxu0 %v6372_v11 }
  0x68   :  { %681 = vmatprep.subr.bf16.mxu0 %v6377_v12 }
  0x6b   :  { %682 = vmatpush1.bf16.msra.mxu0 %v6375_v13 }
  0x6c   :  { %683 = vmatprep.subr.bf16.mxu0 %v6380_v14 }
  0x6f   :  { %684 = vmatpush1.bf16.msra.mxu0 %v6378_v16 }
  0x70   :  { %685 = vmatprep.subr.bf16.mxu0 %v6383_v17 }
  0x73   :  { %686 = vmatpush1.bf16.msra.mxu0 %v6381_v18 }
  0x74   :  { %687 = vmatprep.subr.bf16.mxu0 %v6386_v19 }
  0x77   :  { %688 = vmatpush1.bf16.msra.mxu0 %v6384_v20 }
  0x78   :  { %689 = vmatprep.subr.bf16.mxu0 %v6389_v21 }
  0x7b   :  { %690 = vmatpush1.bf16.msra.mxu0 %v6387_v22 }
  0x7c   :  { %691 = vmatprep.subr.bf16.mxu0 %v6392_v23 }
  0x7f   :  { %692 = vmatpush1.bf16.msra.mxu0 %v6390_v24 }
  0x80   :  { %5318 = vmatprep.subr.bf16.mxu0 %v6393_v25 }
  0x82   :  { %694 = vmatmul.mubr.bf16.vlgmr.msra.gmra.mrb[16].mxu0 %v6775_v41 }
  0x83   :  { %703 = vmatprep.mubr.bf16.mxu0 %v6780_v43  ;;  %5319 = vmatpush3.bf16.msra.mxu0 %v6394_v26 }
  0x84   :  { %5320 = vmatprep.subr.bf16.mxu0 %v6395_v27 }
  0x87   :  { %5321 = vmatpush3.bf16.msra.mxu0 %v6396_v28 }
  0x88   :  { %5322 = vmatprep.subr.bf16.mxu0 %v6397_v29 }
  0x8a   :  { %704 = vmatmul.mubr.bf16.gmra.mrb[20].mxu0 %v6805_v51 }
  0x8b   :  { %20 = vsyncpa [#allocation3], 0  ;;  %713 = vmatprep.mubr.bf16.mxu0 %v6810_v53  ;;  %5323 = vmatpush3.bf16.msra.mxu0 %v6398_v30  ;;  %v6400_v32 = vld [vmem:[%s7764_s1 + $0x88] ss:$20 sps:$4 sm:$0xff]   ;;  %v6401_v33 = vld [vmem:[%s7764_s1 + $0x1f0] ss:$20 sps:$4 sm:$0xff]  }
  0x8c   :  { %5324 = vmatprep.subr.bf16.mxu0 %v6399_v31  ;;  %v6402_v34 = vld [vmem:[%s7764_s1 + $0xb0] ss:$20 sps:$4 sm:$0xff]   ;;  %v6403_v35 = vld [vmem:[%s7764_s1 + $0x218] ss:$20 sps:$4 sm:$0xff]   ;;  %v6405_v37 = vld [vmem:[%s7764_s1 + $0x240] ss:$20 sps:$4 sm:$0xff]  }
  0x8d   :  { %v6404_v36 = vld [vmem:[%s7764_s1 + $0xd8] ss:$20 sps:$4 sm:$0xff]   ;;  %v6406_v38 = vld [vmem:[%s7764_s1 + $0x100] ss:$20 sps:$4 sm:$0xff]   ;;  %v6407_v39 = vld [vmem:[%s7764_s1 + $0x268] ss:$20 sps:$4 sm:$0xff]  }
  0x8e   :  { %v6408_v40 = vld [vmem:[%s7764_s1 + $0x128] ss:$20 sps:$4 sm:$0xff]   ;;  %vm855_vm0 = vcmask 523264   ;;  %s6554_s26 = smov 64   ;;  %v6411_v2 = vld [vmem:[%s7765_s2 + $0x10] sm:$0xff]   ;;  %v6413_v4 = vld [vmem:[%s7765_s2 + $0x20] sm:$0xff]  }
  0x8f   :  { %5325 = vmatpush3.bf16.msra.mxu0 %v6400_v32  ;;  %v6410_v1 = vld [vmem:[%s7765_s2 + $0x8] sm:$0xff]   ;;  %v6412_v3 = vld [vmem:[%s7765_s2 + $0x18] sm:$0xff]   ;;  %s6556_s28 = smov 112   ;;  %s6557_s29 = smov 96   ;;  %vm3291_vm1 = vcmask 130048   ;;  %vm4674_vm2 = vcmask 31744  }
  0x90   :  { %5326 = vmatprep.subr.bf16.mxu0 %v6401_v33  ;;  %s6558_s19 = smov 80   ;;  %s6559_s0 = smov 48   ;;  %vm6569_vm3 = vmmov 0  }
  0x91   :  { %s6560_s24 = smov 32   ;;  %s6561_s25 = smov 16  }
  0x92   :  { %714 = vmatmul.mubr.bf16.gmra.mrb[24].mxu0 %v6835_v61  ;;  %s6562_s27 = smov 124   ;;  %s6564_s16 = smov 116  }
  0x93   :  { %723 = vmatprep.mubr.bf16.mxu0 %v6840_v63  ;;  %5327 = vmatpush3.bf16.msra.mxu0 %v6402_v34  ;;  %s6565_s21 = smov 108   ;;  %s6566_s22 = smov 104  }
  0x94   :  { %5328 = vmatprep.subr.bf16.mxu0 %v6403_v35  ;;  %s6567_s23 = smov 100  }
  0x97   :  { %5329 = vmatpush3.bf16.msra.mxu0 %v6404_v36 }
  0x98   :  { %5330 = vmatprep.subr.bf16.mxu0 %v6405_v37 }
  0x9a   :  { %724 = vmatmul.mubr.bf16.gmra.mrb[28].mxu0 %v6859_v5 }
  0x9b   :  { %5331 = vmatpush3.bf16.msra.mxu0 %v6406_v38  ;;  %766 = vmatprep.mubr.bf16.mxu0 %v6697_v15  ;;  %v6409_v15 = vld [vmem:[%s7765_s2] sm:$0xff]  }
  0x9c   :  { %5332 = vmatprep.subr.bf16.mxu0 %v6407_v39  ;;  %5596 = vmatprep.mubr.msk.bf16.mxu1 %vm855_vm0, %v6409_v15 }
  0x9f   :  { %5333 = vmatpush3.bf16.msra.mxu0 %v6408_v40 }
  0xa2   :  { %767 = vmatmul.mubr.bf16.vlgmr.msra.gmra.mrb[32].mxu0 %v6775_v41 }
  0xa3   :  { %774 = vmatprep.mubr.bf16.mxu0 %v6780_v43 }
  0xaa   :  { %775 = vmatmul.mubr.bf16.gmra.mrb[36].mxu0 %v6805_v51 }
  0xab   :  { %782 = vmatprep.mubr.bf16.mxu0 %v6810_v53 }
  0xb2   :  { %783 = vmatmul.mubr.bf16.gmra.mrb[40].mxu0 %v6835_v61 }
  0xb3   :  { %790 = vmatprep.mubr.bf16.mxu0 %v6840_v63 }
  0xba   :  { %791 = vmatmul.mubr.bf16.gmra.mrb[44].mxu0 %v6859_v5 }
 0x115   :  { %v622_v41 = vpop.f32.mrb[0].mxu0 }
 0x116   :  { %v624_v42 = vpop.f32.mrb[1].mxu0 }
 0x117   :  { %v626_v43 = vpop.f32.mrb[2].mxu0 }
 0x118   :  { %v799_v44 = vpack.c.bf16 %v626_v43, %v622_v41  ;;  %v628_v45 = vpop.f32.mrb[3].mxu0 }
 0x119   :  { %v6984_v46 = vpack.c.bf16 %v628_v45, %v624_v42 }
 0x11a   :  { %1014 = vrot.lane.b32.xlu0 %v799_v44, %s6554_s26  ;;  %5588 = vmatprep.subr.bf16.mxu1 %v799_v44 }
 0x11b   :  { %5589 = vmatpush3.bf16.msra.mxu1 %v799_v44 }
 0x11d   :  { %v632_v47 = vpop.f32.mrb[4].mxu0 }
 0x11e   :  { %v634_v48 = vpop.f32.mrb[5].mxu0 }
 0x11f   :  { %v636_v49 = vpop.f32.mrb[6].mxu0 }
 0x120   :  { %v804_v50 = vpack.c.bf16 %v636_v49, %v632_v47  ;;  %v638_v51 = vpop.f32.mrb[7].mxu0 }
 0x121   :  { %v6987_v52 = vpack.c.bf16 %v638_v51, %v634_v48 }
 0x122   :  { %1016 = vrot.lane.b32.xlu0 %v804_v50, %s6554_s26  ;;  %5590 = vmatprep.subr.bf16.mxu1 %v804_v50 }
 0x123   :  { %5591 = vmatpush3.bf16.msra.mxu1 %v804_v50 }
 0x125   :  { %v642_v53 = vpop.f32.mrb[8].mxu0 }
 0x126   :  { %1258 = vrot.lane.b32.xlu0 %v6984_v46, %s6554_s26  ;;  %v644_v54 = vpop.f32.mrb[9].mxu0 }
 0x127   :  { %v646_v55 = vpop.f32.mrb[10].mxu0 }
 0x128   :  { %v809_v56 = vpack.c.bf16 %v646_v55, %v642_v53  ;;  %v648_v57 = vpop.f32.mrb[11].mxu0 }
 0x129   :  { %v6992_v58 = vpack.c.bf16 %v648_v57, %v644_v54 }
 0x12a   :  { %1018 = vrot.lane.b32.xlu1 %v809_v56, %s6554_s26  ;;  %5592 = vmatprep.subr.bf16.mxu1 %v809_v56 }
 0x12b   :  { %5593 = vmatpush3.bf16.msra.mxu1 %v809_v56  ;;  %1262 = vrot.lane.b32.xlu0 %v6992_v58, %s6554_s26 }
 0x12d   :  { %v652_v59 = vpop.f32.mrb[12].mxu0 }
 0x12e   :  { %v654_v60 = vpop.f32.mrb[13].mxu0 }
 0x12f   :  { %v656_v61 = vpop.f32.mrb[14].mxu0 }
 0x130   :  { %v814_v62 = vpack.c.bf16 %v656_v61, %v652_v59  ;;  %v658_v63 = vpop.f32.mrb[15].mxu0 }
 0x131   :  { %v6997_v0 = vpack.c.bf16 %v658_v63, %v654_v60  ;;  %v819_v63 = vld [vmem:[%s7766_s3] sm:$0xff] }
 0x132   :  { %1020 = vrot.lane.b32.xlu1 %v814_v62, %s6554_s26  ;;  %5594 = vmatprep.subr.bf16.mxu1 %v814_v62 }
 0x133   :  { %5595 = vmatpush3.bf16.msra.mxu1 %v814_v62 }
 0x136   :  { %1260 = vrot.lane.b32.xlu1 %v6987_v52, %s6554_s26  ;;  %5597 = vmatmul.mubr.msk.bf16.vlgmr.msra.gmra.mrb[0].mxu1 %vm855_vm0, %v6410_v1  ;;  %v820_v1 = vld [vmem:[%s7766_s3 + $0x8] sm:$0xff] }
 0x137   :  { %5600 = vmatprep.mubr.msk.bf16.mxu1 %vm855_vm0, %v6411_v2  ;;  %v6555_v2 = vmov 0  }
 0x138   :  { %6296 = vset.pattern.permute.xlu1 %v6555_v2  ;;  %6295 = vset.pattern.permute.xlu0 %v6555_v2 }
 0x13a   :  { %1264 = vrot.lane.b32.xlu1 %v6997_v0, %s6554_s26 }
 0x13e   :  { %5601 = vmatmul.mubr.msk.bf16.gmra.mrb[4].mxu1 %vm855_vm0, %v6412_v3 }
 0x13f   :  { %5612 = vmatprep.mubr.msk.bf16.mxu1 %vm855_vm0, %v6413_v4  ;;  %v822_v4 = vld [vmem:[%s7766_s3 + $0x18] sm:$0xff] }
 0x155   :  { %v695_v5 = vpop.f32.mrb[16].mxu0 }
 0x156   :  { %v697_v6 = vpop.f32.mrb[17].mxu0 }
 0x157   :  { %v699_v7 = vpop.f32.mrb[18].mxu0 }
 0x158   :  { %v7020_v8 = vpack.c.bf16 %v699_v7, %v695_v5  ;;  %v701_v9 = vpop.f32.mrb[19].mxu0  ;;  %v6414_v5 = vld [vmem:[%s7765_s2 + $0x28] sm:$0xff]   ;;  %v6415_v7 = vld [vmem:[%s7765_s2 + $0x30] sm:$0xff]  }
 0x159   :  { %v7022_v10 = vpack.c.bf16 %v701_v9, %v697_v6  ;;  %v821_v6 = vld [vmem:[%s7766_s3 + $0x10] sm:$0xff]  ;;  %v824_v9 = vld [vmem:[%s7766_s3 + $0x28] sm:$0xff] }
 0x15a   :  { %1502 = vrot.lane.b32.xlu0 %v7020_v8, %s6554_s26 }
 0x15d   :  { %v705_v11 = vpop.f32.mrb[20].mxu0 }
 0x15e   :  { %v707_v12 = vpop.f32.mrb[21].mxu0 }
 0x15f   :  { %v709_v13 = vpop.f32.mrb[22].mxu0 }
 0x160   :  { %v7026_v14 = vpack.c.bf16 %v709_v13, %v705_v11  ;;  %v711_v16 = vpop.f32.mrb[23].mxu0  ;;  %v823_v11 = vld [vmem:[%s7766_s3 + $0x20] sm:$0xff]  ;;  %v6416_v13 = vld [vmem:[%s7765_s2 + $0x38] sm:$0xff]  }
 0x161   :  { %v7028_v17 = vpack.c.bf16 %v711_v16, %v707_v12  ;;  %v826_v12 = vld [vmem:[%s7766_s3 + $0x38] sm:$0xff]  ;;  %v825_v16 = vld [vmem:[%s7766_s3 + $0x30] sm:$0xff] }
 0x162   :  { %1504 = vrot.lane.b32.xlu1 %v7026_v14, %s6554_s26 }
 0x165   :  { %v715_v18 = vpop.f32.mrb[24].mxu0 }
 0x166   :  { %v717_v19 = vpop.f32.mrb[25].mxu0 }
 0x167   :  { %v719_v20 = vpop.f32.mrb[26].mxu0 }
 0x168   :  { %v7032_v21 = vpack.c.bf16 %v719_v20, %v715_v18  ;;  %v721_v22 = vpop.f32.mrb[27].mxu0 }
 0x169   :  { %v7034_v23 = vpack.c.bf16 %v721_v22, %v717_v19  ;;  %v6419_v19 = vld [vmem:[%s7765_s2 + $0x50] sm:$0xff]  }
 0x16a   :  { %1506 = vrot.lane.b32.xlu0 %v7032_v21, %s6554_s26 }
 0x16d   :  { %v725_v24 = vpop.f32.mrb[28].mxu0 }
 0x16e   :  { %1746 = vrot.lane.b32.xlu0 %v7022_v10, %s6554_s26  ;;  %v727_v25 = vpop.f32.mrb[29].mxu0 }
 0x16f   :  { %v729_v26 = vpop.f32.mrb[30].mxu0 }
 0x170   :  { %v7040_v27 = vpack.c.bf16 %v729_v26, %v725_v24  ;;  %v731_v28 = vpop.f32.mrb[31].mxu0  ;;  %v6423_v26 = vld [vmem:[%s7765_s2 + $0x70] sm:$0xff]  }
 0x171   :  { %v7042_v29 = vpack.c.bf16 %v731_v28, %v727_v25  ;;  %v6422_v25 = vld [vmem:[%s7765_s2 + $0x68] sm:$0xff]   ;;  %v6424_v28 = vld [vmem:[%s7765_s2 + $0x78] sm:$0xff]  }
 0x172   :  { %1750 = vrot.lane.b32.xlu0 %v7034_v23, %s6554_s26  ;;  %1508 = vrot.lane.b32.xlu1 %v7040_v27, %s6554_s26 }
 0x175   :  { %v5334_v30 = vpop.f32.mrb[32].mxu0 }
 0x176   :  { %1748 = vrot.lane.b32.xlu1 %v7028_v17, %s6554_s26  ;;  %v5335_v31 = vpop.f32.mrb[33].mxu0  ;;  %935 = vperm.xlu0 %6295, %v819_v63  }
 0x177   :  { %v5336_v32 = vadd.f32 %v5335_v31, %v5334_v30  ;;  %v5337_v33 = vpop.f32.mrb[34].mxu0  ;;  %v6425_v30 = vld [vmem:[%s7765_s2 + $0x80] sm:$0xff]  }
 0x178   :  { %v5338_v34 = vpop.f32.mrb[35].mxu0 }
 0x179   :  { %v5339_v35 = vadd.f32 %v5338_v34, %v5337_v33 }
 0x17a   :  { %1752 = vrot.lane.b32.xlu1 %v7042_v29, %s6554_s26  ;;  %950 = vperm.xlu0 %6295, %v822_v4  }
 0x17b   :  { %v7052_v36 = vpack.c.bf16 %v5339_v35, %v5336_v32  ;;  %v6430_v35 = vld [vmem:[%s7765_s2 + $0xa8] sm:$0xff]  }
 0x17d   :  { %v5340_v37 = vpop.f32.mrb[36].mxu0 }
 0x17e   :  { %v5341_v38 = vpop.f32.mrb[37].mxu0  ;;  %940 = vperm.xlu1 %6296, %v820_v1   ;;  %960 = vperm.xlu0 %6295, %v824_v9  }
 0x17f   :  { %v5342_v39 = vadd.f32 %v5341_v38, %v5340_v37  ;;  %v5343_v40 = vpop.f32.mrb[38].mxu0  ;;  %v6431_v37 = vld [vmem:[%s7765_s2 + $0xb0] sm:$0xff]   ;;  %v6432_v38 = vld [vmem:[%s7765_s2 + $0xb8] sm:$0xff]  }
 0x180   :  { %v5344_v15 = vpop.f32.mrb[39].mxu0 }
 0x181   :  { %v5345_v41 = vadd.f32 %v5344_v15, %v5343_v40 }
 0x182   :  { %945 = vperm.xlu1 %6296, %v821_v6   ;;  %970 = vperm.xlu0 %6295, %v826_v12  }
 0x183   :  { %v7054_v42 = vpack.c.bf16 %v5345_v41, %v5342_v39  ;;  %v6433_v39 = vld [vmem:[%s7765_s2 + $0xc0] sm:$0xff]  }
 0x185   :  { %v5346_v43 = vpop.f32.mrb[40].mxu0 }
 0x186   :  { %v5347_v44 = vpop.f32.mrb[41].mxu0  ;;  %955 = vperm.xlu1 %6296, %v823_v11  }
 0x187   :  { %v5348_v45 = vadd.f32 %v5347_v44, %v5346_v43  ;;  %v5349_v47 = vpop.f32.mrb[42].mxu0  ;;  %v6438_v44 = vld [vmem:[%s7765_s2 + $0xe8] sm:$0xff]  }
 0x188   :  { %v5350_v48 = vpop.f32.mrb[43].mxu0 }
 0x189   :  { %v5351_v49 = vadd.f32 %v5350_v48, %v5349_v47  ;;  %v6440_v47 = vld [vmem:[%s7765_s2 + $0xf8] sm:$0xff]   ;;  %v6441_v48 = vld [vmem:[%s7765_s2 + $0x100] sm:$0xff]  }
 0x18a   :  { %965 = vperm.xlu1 %6296, %v825_v16  }
 0x18b   :  { %v7056_v50 = vpack.c.bf16 %v5351_v49, %v5348_v45  ;;  %v6439_v45 = vld [vmem:[%s7765_s2 + $0xf0] sm:$0xff]  }
 0x18c   :  { %v1015_v51 = vpop.permute.xlu0 %1014  ;;  %v6443_v49 = vld [vmem:[%s7765_s2 + $0x110] sm:$0xff]  }
 0x18d   :  { %5604 = vmatprep.subr.bf16.mxu1 %v1015_v51  ;;  %v5352_v53 = vpop.f32.mrb[44].mxu0 }
 0x18e   :  { %5605 = vmatpush3.bf16.msra.mxu1 %v1015_v51  ;;  %v5353_v54 = vpop.f32.mrb[45].mxu0  ;;  %v6450_v51 = vld [vmem:[%s7767_s4 + $0x14] ss:$8 sps:$4 sm:$0xff]  }
 0x18f   :  { %v5354_v55 = vadd.f32 %v5353_v54, %v5352_v53  ;;  %v5355_v56 = vpop.f32.mrb[46].mxu0  ;;  %v6448_v53 = vld [vmem:[%s7767_s4 + $0x10] ss:$8 sps:$4 sm:$0xff]  }
 0x190   :  { %v5356_v57 = vpop.f32.mrb[47].mxu0  ;;  %v6444_v54 = vld [vmem:[%s7765_s2 + $0x118] sm:$0xff]  }
 0x191   :  { %v5357_v59 = vadd.f32 %v5356_v57, %v5355_v56  ;;  %v6451_v56 = vld [vmem:[%s7767_s4 + $0x20] ss:$8 sps:$4 sm:$0xff]   ;;  %v6456_v57 = vld [vmem:[%s7767_s4 + $0x34] ss:$8 sps:$4 sm:$0xff]  }
 0x193   :  { %v7058_v60 = vpack.c.bf16 %v5357_v59, %v5354_v55  ;;  %v6453_v55 = vld [vmem:[%s7767_s4 + $0x24] ss:$8 sps:$4 sm:$0xff]   ;;  %v6454_v59 = vld [vmem:[%s7767_s4 + $0x30] ss:$8 sps:$4 sm:$0xff]  }
 0x194   :  { %v1017_v61 = vpop.permute.xlu0 %1016 }
 0x195   :  { %5606 = vmatprep.subr.bf16.mxu1 %v1017_v61 }
 0x196   :  { %5607 = vmatpush3.bf16.msra.mxu1 %v1017_v61 }
 0x198   :  { %v1259_v18 = vpop.permute.xlu0 %1258 }
 0x19c   :  { %v1019_v62 = vpop.permute.xlu1 %1018 }
 0x19d   :  { %5608 = vmatprep.subr.bf16.mxu1 %v1019_v62  ;;  %v1263_v22 = vpop.permute.xlu0 %1262 }
 0x19e   :  { %5609 = vmatpush3.bf16.msra.mxu1 %v1019_v62 }
 0x1a4   :  { %v1021_v3 = vpop.permute.xlu1 %1020 }
 0x1a5   :  { %5610 = vmatprep.subr.bf16.mxu1 %v1021_v3 }
 0x1a6   :  { %5611 = vmatpush3.bf16.msra.mxu1 %v1021_v3 }
 0x1a7   :  { %5620 = vmatprep.subr.bf16.mxu1 %v6984_v46 }
 0x1a8   :  { %v1261_v20 = vpop.permute.xlu1 %1260 }
 0x1a9   :  { %5613 = vmatmul.mubr.msk.bf16.vlgmr.msra.gmra.mrb[0].mxu1 %vm855_vm0, %v6414_v5 }
 0x1aa   :  { %5621 = vmatpush3.bf16.msra.mxu1 %v6984_v46  ;;  %5616 = vmatprep.mubr.msk.bf16.mxu1 %vm855_vm0, %v6415_v7  ;;  %v6417_v46 = vld [vmem:[%s7765_s2 + $0x40] sm:$0xff]  }
 0x1ab   :  { %5622 = vmatprep.subr.bf16.mxu1 %v6987_v52 }
 0x1ac   :  { %v1265_v24 = vpop.permute.xlu1 %1264 }
 0x1ae   :  { %5623 = vmatpush3.bf16.msra.mxu1 %v6987_v52  ;;  %v6418_v52 = vld [vmem:[%s7765_s2 + $0x48] sm:$0xff]  }
 0x1af   :  { %5624 = vmatprep.subr.bf16.mxu1 %v6992_v58 }
 0x1b1   :  { %5617 = vmatmul.mubr.msk.bf16.gmra.mrb[4].mxu1 %vm855_vm0, %v6416_v13 }
 0x1b2   :  { %5625 = vmatpush3.bf16.msra.mxu1 %v6992_v58  ;;  %5628 = vmatprep.mubr.msk.bf16.mxu1 %vm855_vm0, %v6417_v46  ;;  %v6420_v58 = vld [vmem:[%s7765_s2 + $0x58] sm:$0xff]  }
 0x1b3   :  { %5626 = vmatprep.subr.bf16.mxu1 %v6997_v0 }
 0x1b6   :  { %5627 = vmatpush3.bf16.msra.mxu1 %v6997_v0  ;;  %v6421_v0 = vld [vmem:[%s7765_s2 + $0x60] sm:$0xff]  }
 0x1b7   :  { %5636 = vmatprep.subr.bf16.mxu1 %v1259_v18 }
 0x1b9   :  { %5629 = vmatmul.mubr.msk.bf16.vlgmr.msra.gmra.mrb[0].mxu1 %vm855_vm0, %v6418_v52 }
 0x1ba   :  { %5637 = vmatpush3.bf16.msra.mxu1 %v1259_v18  ;;  %5632 = vmatprep.mubr.msk.bf16.mxu1 %vm855_vm0, %v6419_v19 }
 0x1bb   :  { %5638 = vmatprep.subr.bf16.mxu1 %v1261_v20 }
 0x1be   :  { %5639 = vmatpush3.bf16.msra.mxu1 %v1261_v20 }
 0x1bf   :  { %5640 = vmatprep.subr.bf16.mxu1 %v1263_v22 }
 0x1c1   :  { %5633 = vmatmul.mubr.msk.bf16.gmra.mrb[4].mxu1 %vm855_vm0, %v6420_v58 }
 0x1c2   :  { %5641 = vmatpush3.bf16.msra.mxu1 %v1263_v22  ;;  %5644 = vmatprep.mubr.msk.bf16.mxu1 %vm855_vm0, %v6421_v0 }
 0x1c3   :  { %5642 = vmatprep.subr.bf16.mxu1 %v1265_v24 }
 0x1c6   :  { %5643 = vmatpush3.bf16.msra.mxu1 %v1265_v24 }
 0x1c7   :  { %5652 = vmatprep.subr.bf16.mxu1 %v7020_v8 }
 0x1c9   :  { %5645 = vmatmul.mubr.msk.bf16.vlgmr.msra.gmra.mrb[0].mxu1 %vm855_vm0, %v6422_v25 }
 0x1ca   :  { %5653 = vmatpush3.bf16.msra.mxu1 %v7020_v8  ;;  %5648 = vmatprep.mubr.msk.bf16.mxu1 %vm855_vm0, %v6423_v26  ;;  %v6426_v8 = vld [vmem:[%s7765_s2 + $0x88] sm:$0xff]  }
 0x1cb   :  { %5654 = vmatprep.subr.bf16.mxu1 %v7026_v14 }
 0x1cc   :  { %v1503_v31 = vpop.permute.xlu0 %1502 }
 0x1ce   :  { %5655 = vmatpush3.bf16.msra.mxu1 %v7026_v14  ;;  %v6427_v14 = vld [vmem:[%s7765_s2 + $0x90] sm:$0xff]  }
 0x1cf   :  { %5656 = vmatprep.subr.bf16.mxu1 %v7032_v21 }
 0x1d1   :  { %5649 = vmatmul.mubr.msk.bf16.gmra.mrb[4].mxu1 %vm855_vm0, %v6424_v28 }
 0x1d2   :  { %5657 = vmatpush3.bf16.msra.mxu1 %v7032_v21  ;;  %5660 = vmatprep.mubr.msk.bf16.mxu1 %vm855_vm0, %v6425_v30  ;;  %v6428_v21 = vld [vmem:[%s7765_s2 + $0x98] sm:$0xff]  }
 0x1d3   :  { %5658 = vmatprep.subr.bf16.mxu1 %v7040_v27 }
 0x1d4   :  { %v1505_v32 = vpop.permute.xlu1 %1504 }
 0x1d6   :  { %5659 = vmatpush3.bf16.msra.mxu1 %v7040_v27  ;;  %v6429_v27 = vld [vmem:[%s7765_s2 + $0xa0] sm:$0xff]  }
 0x1d7   :  { %5668 = vmatprep.subr.bf16.mxu1 %v1503_v31 }
 0x1d9   :  { %5661 = vmatmul.mubr.msk.bf16.vlgmr.msra.gmra.mrb[0].mxu1 %vm855_vm0, %v6426_v8 }
 0x1da   :  { %5669 = vmatpush3.bf16.msra.mxu1 %v1503_v31  ;;  %5664 = vmatprep.mubr.msk.bf16.mxu1 %vm855_vm0, %v6427_v14 }
 0x1db   :  { %5670 = vmatprep.subr.bf16.mxu1 %v1505_v32 }
 0x1dc   :  { %v1507_v33 = vpop.permute.xlu0 %1506 }
 0x1de   :  { %5671 = vmatpush3.bf16.msra.mxu1 %v1505_v32 }
 0x1df   :  { %5672 = vmatprep.subr.bf16.mxu1 %v1507_v33 }
 0x1e0   :  { %v1747_v40 = vpop.permute.xlu0 %1746 }
 0x1e1   :  { %5665 = vmatmul.mubr.msk.bf16.gmra.mrb[4].mxu1 %vm855_vm0, %v6428_v21 }
 0x1e2   :  { %5673 = vmatpush3.bf16.msra.mxu1 %v1507_v33  ;;  %5676 = vmatprep.mubr.msk.bf16.mxu1 %vm855_vm0, %v6429_v27 }
 0x1e4   :  { %v1509_v34 = vpop.permute.xlu1 %1508  ;;  %v1751_v41 = vpop.permute.xlu0 %1750 }
 0x1e5   :  { %5674 = vmatprep.subr.bf16.mxu1 %v1509_v34 }
 0x1e6   :  { %5675 = vmatpush3.bf16.msra.mxu1 %v1509_v34 }
 0x1e7   :  { %5684 = vmatprep.subr.bf16.mxu1 %v7022_v10 }
 0x1e8   :  { %v1749_v15 = vpop.permute.xlu1 %1748 }
 0x1e9   :  { %5677 = vmatmul.mubr.msk.bf16.vlgmr.msra.gmra.mrb[0].mxu1 %vm855_vm0, %v6430_v35  ;;  %v6457_v35 = vld [vmem:[%s7768_s5] sm:$0xff]  }
 0x1ea   :  { %5685 = vmatpush3.bf16.msra.mxu1 %v7022_v10  ;;  %5680 = vmatprep.mubr.msk.bf16.mxu1 %vm855_vm0, %v6431_v37  ;;  %v6434_v10 = vld [vmem:[%s7765_s2 + $0xc8] sm:$0xff]  }
 0x1eb   :  { %5686 = vmatprep.subr.bf16.mxu1 %v7028_v17  ;;  %5740 = vmatprep.mubr.msk.bf16.mxu0 %vm855_vm0, %v6457_v35  ;;  %v6473_v35 = vld [vmem:[%s7768_s5 + $0x80] sm:$0xff]  }
 0x1ec   :  { %v1753_v43 = vpop.permute.xlu1 %1752 }
 0x1ee   :  { %5687 = vmatpush3.bf16.msra.mxu1 %v7028_v17  ;;  %v6435_v17 = vld [vmem:[%s7765_s2 + $0xd0] sm:$0xff]  }
 0x1ef   :  { %5688 = vmatprep.subr.bf16.mxu1 %v7034_v23 }
 0x1f1   :  { %5681 = vmatmul.mubr.msk.bf16.gmra.mrb[4].mxu1 %vm855_vm0, %v6432_v38 }
 0x1f2   :  { %5689 = vmatpush3.bf16.msra.mxu1 %v7034_v23  ;;  %5692 = vmatprep.mubr.msk.bf16.mxu1 %vm855_vm0, %v6433_v39  ;;  %v6436_v23 = vld [vmem:[%s7765_s2 + $0xd8] sm:$0xff]  }
 0x1f3   :  { %5690 = vmatprep.subr.bf16.mxu1 %v7042_v29 }
 0x1f5   :  { %v936_v61 = vpop.permute.xlu0 %935 }
 0x1f6   :  { %5691 = vmatpush3.bf16.msra.mxu1 %v7042_v29  ;;  %v6437_v29 = vld [vmem:[%s7765_s2 + $0xe0] sm:$0xff]  }
 0x1f7   :  { %5700 = vmatprep.subr.bf16.mxu1 %v1747_v40 }
 0x1f9   :  { %5693 = vmatmul.mubr.msk.bf16.vlgmr.msra.gmra.mrb[0].mxu1 %vm855_vm0, %v6434_v10  ;;  %v951_v63 = vpop.permute.xlu0 %950 }
 0x1fa   :  { %5701 = vmatpush3.bf16.msra.mxu1 %v1747_v40  ;;  %5696 = vmatprep.mubr.msk.bf16.mxu1 %vm855_vm0, %v6435_v17 }
 0x1fb   :  { %5702 = vmatprep.subr.bf16.mxu1 %v1749_v15 }
 0x1fd   :  { %v961_v12 = vpop.permute.xlu0 %960 }
 0x1fe   :  { %5703 = vmatpush3.bf16.msra.mxu1 %v1749_v15 }
 0x1ff   :  { %5704 = vmatprep.subr.bf16.mxu1 %v1751_v41 }
 0x201   :  { %5697 = vmatmul.mubr.msk.bf16.gmra.mrb[4].mxu1 %vm855_vm0, %v6436_v23  ;;  %v971_v25 = vpop.permute.xlu0 %970 }
 0x202   :  { %5705 = vmatpush3.bf16.msra.mxu1 %v1751_v41  ;;  %5708 = vmatprep.mubr.msk.bf16.mxu1 %vm855_vm0, %v6437_v29 }
 0x203   :  { %5706 = vmatprep.subr.bf16.mxu1 %v1753_v43 }
 0x206   :  { %5707 = vmatpush3.bf16.msra.mxu1 %v1753_v43 }
 0x207   :  { %5716 = vmatprep.subr.bf16.mxu1 %v7052_v36 }
 0x209   :  { %5709 = vmatmul.mubr.msk.bf16.vlgmr.msra.gmra.mrb[0].mxu1 %vm855_vm0, %v6438_v44 }
 0x20a   :  { %5717 = vmatpush3.bf16.msra.mxu1 %v7052_v36  ;;  %5712 = vmatprep.mubr.msk.bf16.mxu1 %vm855_vm0, %v6439_v45  ;;  %v6447_v36 = vld [vmem:[%s7767_s4 + $0x4] ss:$8 sps:$4 sm:$0xff]  }
 0x20b   :  { %5718 = vmatprep.subr.bf16.mxu1 %v7054_v42 }
 0x20e   :  { %5719 = vmatpush3.bf16.msra.mxu1 %v7054_v42  ;;  %v6442_v42 = vld [vmem:[%s7765_s2 + $0x108] sm:$0xff]  }
 0x20f   :  { %5720 = vmatprep.subr.bf16.mxu1 %v7056_v50 }
 0x211   :  { %5713 = vmatmul.mubr.msk.bf16.gmra.mrb[4].mxu1 %vm855_vm0, %v6440_v47 }
 0x212   :  { %5721 = vmatpush3.bf16.msra.mxu1 %v7056_v50  ;;  %5724 = vmatprep.mubr.msk.bf16.mxu1 %vm855_vm0, %v6441_v48  ;;  %v6445_v50 = vld [vmem:[%s7767_s4] ss:$8 sps:$4 sm:$0xff]  }
 0x213   :  { %5722 = vmatprep.subr.bf16.mxu1 %v7058_v60 }
 0x216   :  { %5723 = vmatpush3.bf16.msra.mxu1 %v7058_v60  ;;  %v941_v60 = vpop.permute.xlu1 %940 }
 0x217   :  { %2029 = vmatprep.subr.bf16.mxu1 %v6447_v36 }
 0x219   :  { %5725 = vmatmul.mubr.msk.bf16.vlgmr.msra.gmra.mrb[0].mxu1 %vm855_vm0, %v6442_v42 }
 0x21a   :  { %5728 = vmatprep.mubr.msk.bf16.mxu1 %vm855_vm0, %v6443_v49  ;;  %2030 = vmatpush1.bf16.msra.mxu1 %v6445_v50  ;;  %v946_v62 = vpop.permute.xlu1 %945 }
 0x21b   :  { %2031 = vmatprep.subr.bf16.mxu1 %v6450_v51 }
 0x21e   :  { %2032 = vmatpush1.bf16.msra.mxu1 %v6448_v53  ;;  %v956_v5 = vpop.permute.xlu1 %955 }
 0x21f   :  { %2033 = vmatprep.subr.bf16.mxu1 %v6453_v55 }
 0x221   :  { %5729 = vmatmul.mubr.msk.bf16.gmra.mrb[4].mxu1 %vm855_vm0, %v6444_v54 }
 0x222   :  { %2061 = vmatprep.mubr.bf16.mxu1 %v6555_v2  ;;  %2034 = vmatpush1.bf16.msra.mxu1 %v6451_v56  ;;  %v966_v20 = vpop.permute.xlu1 %965  ;;  %v6458_v56 = vld [vmem:[%s7768_s5 + $0x8] sm:$0xff]  }
 0x223   :  { %2035 = vmatprep.subr.bf16.mxu1 %v6456_v57  ;;  %v6459_v57 = vld [vmem:[%s7768_s5 + $0x10] sm:$0xff]  }
 0x226   :  { %2036 = vmatpush1.bf16.msra.mxu1 %v6454_v59  ;;  %v6460_v59 = vld [vmem:[%s7768_s5 + $0x18] sm:$0xff]  }
 0x2ec   :  { %v5726_v1 = vpop.f32.mrb[0].mxu1 }
 0x2ed   :  { %v6061_v3 = vadd.f32 %v5726_v1, %v946_v62  ;;  %v1918_v4 = vpop.f32.mrb[1].mxu1  ;;  %v2112_v62 = vld [vmem:[%s7769_s6 + $0x10] sm:$0xff]  ;;  %v2111_v1 = vld [vmem:[%s7769_s6 + $0x8] sm:$0xff] }
 0x2ee   :  { %v6062_v6 = vadd.f32 %v1918_v4, %v936_v61  ;;  %v5727_v7 = vpop.f32.mrb[2].mxu1  ;;  %v2110_v61 = vld [vmem:[%s7769_s6] sm:$0xff]  ;;  %v2113_v4 = vld [vmem:[%s7769_s6 + $0x18] sm:$0xff] }
 0x2ef   :  { %v6063_v9 = vadd.f32 %v5727_v7, %v951_v63  ;;  %v1921_v11 = vpop.f32.mrb[3].mxu1  ;;  %v1959_v16 = vmax.f32 %v6061_v3, 0.0  ;;  %v2114_v63 = vld [vmem:[%s7769_s6 + $0x20] sm:$0xff]  ;;  %v2116_v3 = vld [vmem:[%s7769_s6 + $0x30] sm:$0xff] }
 0x2f0   :  { %v6064_v13 = vadd.f32 %v1921_v11, %v941_v60  ;;  %v1957_v52 = vmax.f32 %v6062_v6, 0.0  ;;  %v6461_v60 = vld [vmem:[%s7768_s5 + $0x20] sm:$0xff]   ;;  %v2117_v6 = vld [vmem:[%s7769_s6 + $0x38] sm:$0xff] }
 0x2f1   :  { %v1960_v46 = vmax.f32 %v6063_v9, 0.0 }
 0x2f2   :  { %v1958_v18 = vmax.f32 %v6064_v13, 0.0 }
 0x2f3   :  { %v1966_v19 = vpack.c.bf16 %v1960_v46, %v1959_v16  ;;  %v6462_v16 = vld [vmem:[%s7768_s5 + $0x28] sm:$0xff]  }
 0x2f4   :  { %v1965_v58 = vpack.c.bf16 %v1958_v18, %v1957_v52  ;;  %v5730_v22 = vpop.f32.mrb[4].mxu1  ;;  %v6463_v52 = vld [vmem:[%s7768_s5 + $0x30] sm:$0xff]  }
 0x2f5   :  { %v6065_v0 = vadd.f32 %v5730_v22, %v966_v20  ;;  %v1934_v24 = vpop.f32.mrb[5].mxu1 }
 0x2f6   :  { %v6066_v26 = vadd.f32 %v1934_v24, %v956_v5  ;;  %v5731_v28 = vpop.f32.mrb[6].mxu1  ;;  %5035 = vmatmul.mubr.msk.bf16.vlgmr.msra.gmra.mrb[8].mxu1 %vm855_vm0, %v1965_v58  ;;  %v2115_v5 = vld [vmem:[%s7769_s6 + $0x28] sm:$0xff]  ;;  %v6465_v58 = vld [vmem:[%s7768_s5 + $0x40] sm:$0xff]  }
 0x2f7   :  { %v6067_v30 = vadd.f32 %v5731_v28, %v971_v25  ;;  %v1937_v8 = vpop.f32.mrb[7].mxu1  ;;  %2071 = vmatprep.mubr.bf16.mxu1 %v6555_v2  ;;  %v1963_v14 = vmax.f32 %v6065_v0, 0.0  ;;  %v6466_v0 = vld [vmem:[%s7768_s5 + $0x48] sm:$0xff]   ;;  %v6467_v25 = vld [vmem:[%s7768_s5 + $0x50] sm:$0xff]   ;;  %v6468_v28 = vld [vmem:[%s7768_s5 + $0x58] sm:$0xff]  }
 0x2f8   :  { %v6068_v31 = vadd.f32 %v1937_v8, %v961_v12  ;;  %v1961_v21 = vmax.f32 %v6066_v26, 0.0  ;;  %v6493_v12 = vld [vmem:[%s7770_s7] sm:$0xff]   ;;  %s6563_s7 = smov 120  }
 0x2f9   :  { %v1964_v32 = vmax.f32 %v6067_v30, 0.0  ;;  %5876 = vmatprep.subr.bf16.mxu1 %v6493_v12  ;;  %v6469_v8 = vld [vmem:[%s7768_s5 + $0x60] sm:$0xff]  }
 0x2fa   :  { %v1962_v33 = vmax.f32 %v6068_v31, 0.0  ;;  %5877 = vmatpush3.bf16.msra.mxu1 %v6493_v12 }
 0x2fb   :  { %v1968_v27 = vpack.c.bf16 %v1964_v32, %v1963_v14  ;;  %v6470_v14 = vld [vmem:[%s7768_s5 + $0x68] sm:$0xff]  }
 0x2fc   :  { %v1967_v34 = vpack.c.bf16 %v1962_v33, %v1961_v21  ;;  %v6471_v21 = vld [vmem:[%s7768_s5 + $0x70] sm:$0xff]  }
 0x2fe   :  { %5036 = vmatmul.mubr.msk.bf16.gmra.mrb[12].mxu1 %vm855_vm0, %v1966_v19  ;;  %v6464_v19 = vld [vmem:[%s7768_s5 + $0x38] sm:$0xff]  }
 0x2ff   :  { %2081 = vmatprep.mubr.bf16.mxu1 %v6555_v2 }
 0x306   :  { %5037 = vmatmul.mubr.msk.bf16.gmra.mrb[16].mxu1 %vm855_vm0, %v1967_v34 }
 0x307   :  { %2091 = vmatprep.mubr.bf16.mxu1 %v6555_v2 }
 0x30e   :  { %5038 = vmatmul.mubr.msk.bf16.gmra.mrb[20].mxu1 %vm855_vm0, %v1968_v27  ;;  %v6472_v27 = vld [vmem:[%s7768_s5 + $0x78] sm:$0xff]  }
 0x3c9   :  { %v2063_v37 = vpop.f32.mrb[8].mxu1 }
 0x3ca   :  { %v2065_v38 = vpop.f32.mrb[9].mxu1 }
 0x3cb   :  { %v2067_v39 = vpop.f32.mrb[10].mxu1 }
 0x3cc   :  { %v7278_v10 = vpack.c.bf16 %v2067_v39, %v2063_v37  ;;  %v2069_v40 = vpop.f32.mrb[11].mxu1 }
 0x3cd   :  { %v7280_v17 = vpack.c.bf16 %v2069_v40, %v2065_v38  ;;  %v6474_v38 = vld [vmem:[%s7768_s5 + $0x88] sm:$0xff]  }
 0x3ce   :  { %2304 = vrot.lane.b32.xlu1 %v7278_v10, %s6556_s28  ;;  %5732 = vmatprep.subr.bf16.mxu0 %v7278_v10 }
 0x3cf   :  { %5733 = vmatpush3.bf16.msra.mxu0 %v7278_v10 }
 0x3d1   :  { %v2073_v2 = vpop.f32.mrb[12].mxu1 }
 0x3d2   :  { %v2075_v15 = vpop.f32.mrb[13].mxu1 }
 0x3d3   :  { %v2077_v23 = vpop.f32.mrb[14].mxu1 }
 0x3d4   :  { %v2104_v41 = vpack.c.bf16 %v2077_v23, %v2073_v2  ;;  %v2079_v29 = vpop.f32.mrb[15].mxu1  ;;  %v6476_v2 = vld [vmem:[%s7768_s5 + $0x98] sm:$0xff]   ;;  %v6477_v23 = vld [vmem:[%s7768_s5 + $0xa0] sm:$0xff]  }
 0x3d5   :  { %v7286_v43 = vpack.c.bf16 %v2079_v29, %v2075_v15  ;;  %v6478_v29 = vld [vmem:[%s7768_s5 + $0xa8] sm:$0xff]  }
 0x3d6   :  { %2306 = vrot.lane.b32.xlu0 %v2104_v41, %s6556_s28  ;;  %5734 = vmatprep.subr.bf16.mxu0 %v2104_v41 }
 0x3d7   :  { %5735 = vmatpush3.bf16.msra.mxu0 %v2104_v41 }
 0x3d9   :  { %v2083_v44 = vpop.f32.mrb[16].mxu1 }
 0x3da   :  { %v2085_v45 = vpop.f32.mrb[17].mxu1 }
 0x3db   :  { %v2087_v47 = vpop.f32.mrb[18].mxu1 }
 0x3dc   :  { %v2106_v48 = vpack.c.bf16 %v2087_v47, %v2083_v44  ;;  %v2089_v36 = vpop.f32.mrb[19].mxu1 }
 0x3dd   :  { %v7289_v42 = vpack.c.bf16 %v2089_v36, %v2085_v45  ;;  %v6479_v45 = vld [vmem:[%s7768_s5 + $0xb0] sm:$0xff]  }
 0x3de   :  { %2308 = vrot.lane.b32.xlu1 %v2106_v48, %s6556_s28  ;;  %5736 = vmatprep.subr.bf16.mxu0 %v2106_v48 }
 0x3df   :  { %5737 = vmatpush3.bf16.msra.mxu0 %v2106_v48 }
 0x3e1   :  { %v2093_v49 = vpop.f32.mrb[20].mxu1 }
 0x3e2   :  { %2430 = vrot.lane.b32.xlu1 %v7278_v10, %s6557_s29  ;;  %v2095_v50 = vpop.f32.mrb[21].mxu1 }
 0x3e3   :  { %v2097_v51 = vpop.f32.mrb[22].mxu1 }
 0x3e4   :  { %v2108_v53 = vpack.c.bf16 %v2097_v51, %v2093_v49  ;;  %v2099_v54 = vpop.f32.mrb[23].mxu1  ;;  %v6481_v49 = vld [vmem:[%s7768_s5 + $0xc0] sm:$0xff]   ;;  %v6482_v51 = vld [vmem:[%s7768_s5 + $0xc8] sm:$0xff]  }
 0x3e5   :  { %v7294_v55 = vpack.c.bf16 %v2099_v54, %v2095_v50  ;;  %v6483_v54 = vld [vmem:[%s7768_s5 + $0xd0] sm:$0xff]  }
 0x3e6   :  { %2434 = vrot.lane.b32.xlu1 %v2106_v48, %s6557_s29  ;;  %2310 = vrot.lane.b32.xlu0 %v2108_v53, %s6556_s28 }
 0x3e7   :  { %5738 = vmatprep.subr.bf16.mxu0 %v2108_v53 }
 0x3e8   :  { %5739 = vmatpush3.bf16.msra.mxu0 %v2108_v53 }
 0x3ea   :  { %2556 = vrot.lane.b32.xlu1 %v7278_v10, %s6558_s19  ;;  %2432 = vrot.lane.b32.xlu0 %v2104_v41, %s6557_s29 }
 0x3eb   :  { %5741 = vmatmul.mubr.msk.bf16.vlgmr.msra.gmra.mrb[48].mxu0 %vm855_vm0, %v6458_v56 }
 0x3ec   :  { %5744 = vmatprep.mubr.msk.bf16.mxu0 %vm855_vm0, %v6459_v57  ;;  %v6484_v57 = vld [vmem:[%s7768_s5 + $0xd8] sm:$0xff]  }
 0x3ee   :  { %2560 = vrot.lane.b32.xlu1 %v2106_v48, %s6558_s19  ;;  %2436 = vrot.lane.b32.xlu0 %v2108_v53, %s6557_s29 }
 0x3f2   :  { %2682 = vrot.lane.b32.xlu1 %v7278_v10, %s6554_s26  ;;  %2558 = vrot.lane.b32.xlu0 %v2104_v41, %s6558_s19 }
 0x3f3   :  { %5745 = vmatmul.mubr.msk.bf16.gmra.mrb[52].mxu0 %vm855_vm0, %v6460_v59 }
 0x3f4   :  { %5756 = vmatprep.mubr.msk.bf16.mxu0 %vm855_vm0, %v6461_v60  ;;  %v6485_v60 = vld [vmem:[%s7768_s5 + $0xe0] sm:$0xff]  }
 0x3f6   :  { %2686 = vrot.lane.b32.xlu1 %v2106_v48, %s6554_s26  ;;  %2562 = vrot.lane.b32.xlu0 %v2108_v53, %s6558_s19 }
 0x3fa   :  { %2808 = vrot.lane.b32.xlu1 %v7278_v10, %s6559_s0  ;;  %2684 = vrot.lane.b32.xlu0 %v2104_v41, %s6554_s26 }
 0x3fe   :  { %2812 = vrot.lane.b32.xlu1 %v2106_v48, %s6559_s0  ;;  %2688 = vrot.lane.b32.xlu0 %v2108_v53, %s6554_s26 }
 0x402   :  { %2934 = vrot.lane.b32.xlu1 %v7278_v10, %s6560_s24  ;;  %2810 = vrot.lane.b32.xlu0 %v2104_v41, %s6559_s0 }
 0x406   :  { %2938 = vrot.lane.b32.xlu1 %v2106_v48, %s6560_s24  ;;  %2814 = vrot.lane.b32.xlu0 %v2108_v53, %s6559_s0 }
 0x40a   :  { %3060 = vrot.lane.b32.xlu1 %v7278_v10, %s6561_s25  ;;  %2936 = vrot.lane.b32.xlu0 %v2104_v41, %s6560_s24  ;;  %v6475_v10 = vld [vmem:[%s7768_s5 + $0x90] sm:$0xff]  }
 0x40e   :  { %3064 = vrot.lane.b32.xlu1 %v2106_v48, %s6561_s25  ;;  %2940 = vrot.lane.b32.xlu0 %v2108_v53, %s6560_s24  ;;  %v6480_v48 = vld [vmem:[%s7768_s5 + $0xb8] sm:$0xff]  }
 0x412   :  { %2225 = vperm.xlu1 %6296, %v2110_v61   ;;  %3062 = vrot.lane.b32.xlu0 %v2104_v41, %s6561_s25 }
 0x416   :  { %2235 = vperm.xlu1 %6296, %v2112_v62   ;;  %3066 = vrot.lane.b32.xlu0 %v2108_v53, %s6561_s25  ;;  %v6486_v62 = vld [vmem:[%s7768_s5 + $0xe8] sm:$0xff]  }
 0x41a   :  { %2245 = vperm.xlu1 %6296, %v2114_v63   ;;  %2230 = vperm.xlu0 %6295, %v2111_v1   ;;  %v6487_v63 = vld [vmem:[%s7768_s5 + $0xf0] sm:$0xff]   ;;  %v6488_v1 = vld [vmem:[%s7768_s5 + $0xf8] sm:$0xff]  }
 0x41e   :  { %2255 = vperm.xlu1 %6296, %v2116_v3   ;;  %2240 = vperm.xlu0 %6295, %v2113_v4   ;;  %v6489_v3 = vld [vmem:[%s7768_s5 + $0x100] sm:$0xff]  }
 0x422   :  { %2250 = vperm.xlu0 %6295, %v2115_v5  }
 0x426   :  { %2260 = vperm.xlu0 %6295, %v2117_v6  }
 0x440   :  { %v2305_v7 = vpop.permute.xlu1 %2304 }
 0x441   :  { %5748 = vmatprep.subr.bf16.mxu0 %v2305_v7 }
 0x442   :  { %5749 = vmatpush3.bf16.msra.mxu0 %v2305_v7 }
 0x448   :  { %v2307_v9 = vpop.permute.xlu0 %2306 }
 0x449   :  { %5750 = vmatprep.subr.bf16.mxu0 %v2307_v9 }
 0x44a   :  { %5751 = vmatpush3.bf16.msra.mxu0 %v2307_v9 }
 0x450   :  { %v2309_v11 = vpop.permute.xlu1 %2308 }
 0x451   :  { %5752 = vmatprep.subr.bf16.mxu0 %v2309_v11 }
 0x452   :  { %5753 = vmatpush3.bf16.msra.mxu0 %v2309_v11 }
 0x454   :  { %v2431_v46 = vpop.permute.xlu1 %2430 }
 0x458   :  { %v2311_v13 = vpop.permute.xlu0 %2310  ;;  %v2435_v20 = vpop.permute.xlu1 %2434 }
 0x459   :  { %5754 = vmatprep.subr.bf16.mxu0 %v2311_v13 }
 0x45a   :  { %5755 = vmatpush3.bf16.msra.mxu0 %v2311_v13 }
 0x45b   :  { %5764 = vmatprep.subr.bf16.mxu0 %v2431_v46 }
 0x45c   :  { %v2433_v18 = vpop.permute.xlu0 %2432  ;;  %v2557_v24 = vpop.permute.xlu1 %2556 }
 0x45d   :  { %5757 = vmatmul.mubr.msk.bf16.vlgmr.msra.gmra.mrb[48].mxu0 %vm855_vm0, %v6462_v16 }
 0x45e   :  { %5765 = vmatpush3.bf16.msra.mxu0 %v2431_v46  ;;  %5760 = vmatprep.mubr.msk.bf16.mxu0 %vm855_vm0, %v6463_v52 }
 0x45f   :  { %5766 = vmatprep.subr.bf16.mxu0 %v2433_v18 }
 0x460   :  { %v2437_v22 = vpop.permute.xlu0 %2436  ;;  %v2561_v30 = vpop.permute.xlu1 %2560 }
 0x462   :  { %5767 = vmatpush3.bf16.msra.mxu0 %v2433_v18 }
 0x463   :  { %5768 = vmatprep.subr.bf16.mxu0 %v2435_v20 }
 0x464   :  { %v2559_v26 = vpop.permute.xlu0 %2558  ;;  %v2683_v32 = vpop.permute.xlu1 %2682 }
 0x465   :  { %5761 = vmatmul.mubr.msk.bf16.gmra.mrb[52].mxu0 %vm855_vm0, %v6464_v19 }
 0x466   :  { %5769 = vmatpush3.bf16.msra.mxu0 %v2435_v20  ;;  %5772 = vmatprep.mubr.msk.bf16.mxu0 %vm855_vm0, %v6465_v58 }
 0x467   :  { %5770 = vmatprep.subr.bf16.mxu0 %v2437_v22 }
 0x468   :  { %v2563_v31 = vpop.permute.xlu0 %2562  ;;  %v2687_v34 = vpop.permute.xlu1 %2686 }
 0x46a   :  { %5771 = vmatpush3.bf16.msra.mxu0 %v2437_v22 }
 0x46b   :  { %5780 = vmatprep.subr.bf16.mxu0 %v2557_v24 }
 0x46c   :  { %v2685_v33 = vpop.permute.xlu0 %2684  ;;  %v2809_v39 = vpop.permute.xlu1 %2808 }
 0x46d   :  { %5773 = vmatmul.mubr.msk.bf16.vlgmr.msra.gmra.mrb[48].mxu0 %vm855_vm0, %v6466_v0 }
 0x46e   :  { %5781 = vmatpush3.bf16.msra.mxu0 %v2557_v24  ;;  %5776 = vmatprep.mubr.msk.bf16.mxu0 %vm855_vm0, %v6467_v25 }
 0x46f   :  { %5782 = vmatprep.subr.bf16.mxu0 %v2559_v26 }
 0x470   :  { %v2689_v37 = vpop.permute.xlu0 %2688  ;;  %v2813_v15 = vpop.permute.xlu1 %2812 }
 0x472   :  { %5783 = vmatpush3.bf16.msra.mxu0 %v2559_v26 }
 0x473   :  { %5784 = vmatprep.subr.bf16.mxu0 %v2561_v30 }
 0x474   :  { %v2811_v40 = vpop.permute.xlu0 %2810  ;;  %v2935_v44 = vpop.permute.xlu1 %2934 }
 0x475   :  { %5777 = vmatmul.mubr.msk.bf16.gmra.mrb[52].mxu0 %vm855_vm0, %v6468_v28 }
 0x476   :  { %5785 = vmatpush3.bf16.msra.mxu0 %v2561_v30  ;;  %5788 = vmatprep.mubr.msk.bf16.mxu0 %vm855_vm0, %v6469_v8 }
 0x477   :  { %5786 = vmatprep.subr.bf16.mxu0 %v2563_v31 }
 0x478   :  { %v2815_v41 = vpop.permute.xlu0 %2814  ;;  %v2939_v36 = vpop.permute.xlu1 %2938 }
 0x47a   :  { %5787 = vmatpush3.bf16.msra.mxu0 %v2563_v31 }
 0x47b   :  { %5796 = vmatprep.subr.bf16.mxu0 %v2683_v32 }
 0x47c   :  { %v2937_v47 = vpop.permute.xlu0 %2936  ;;  %v3061_v53 = vpop.permute.xlu1 %3060 }
 0x47d   :  { %5789 = vmatmul.mubr.msk.bf16.vlgmr.msra.gmra.mrb[48].mxu0 %vm855_vm0, %v6470_v14 }
 0x47e   :  { %5797 = vmatpush3.bf16.msra.mxu0 %v2683_v32  ;;  %5792 = vmatprep.mubr.msk.bf16.mxu0 %vm855_vm0, %v6471_v21 }
 0x47f   :  { %5798 = vmatprep.subr.bf16.mxu0 %v2685_v33 }
 0x480   :  { %v2941_v50 = vpop.permute.xlu0 %2940  ;;  %v3065_v59 = vpop.permute.xlu1 %3064 }
 0x482   :  { %5799 = vmatpush3.bf16.msra.mxu0 %v2685_v33 }
 0x483   :  { %5800 = vmatprep.subr.bf16.mxu0 %v2687_v34 }
 0x484   :  { %v3063_v56 = vpop.permute.xlu0 %3062 }
 0x485   :  { %5793 = vmatmul.mubr.msk.bf16.gmra.mrb[52].mxu0 %vm855_vm0, %v6472_v27 }
 0x486   :  { %5801 = vmatpush3.bf16.msra.mxu0 %v2687_v34  ;;  %5804 = vmatprep.mubr.msk.bf16.mxu0 %vm855_vm0, %v6473_v35 }
 0x487   :  { %5802 = vmatprep.subr.bf16.mxu0 %v2689_v37 }
 0x488   :  { %v3067_v61 = vpop.permute.xlu0 %3066 }
 0x48a   :  { %5803 = vmatpush3.bf16.msra.mxu0 %v2689_v37 }
 0x48b   :  { %5812 = vmatprep.subr.bf16.mxu0 %v2809_v39 }
 0x48d   :  { %5805 = vmatmul.mubr.msk.bf16.vlgmr.msra.gmra.mrb[48].mxu0 %vm855_vm0, %v6474_v38 }
 0x48e   :  { %5813 = vmatpush3.bf16.msra.mxu0 %v2809_v39  ;;  %5808 = vmatprep.mubr.msk.bf16.mxu0 %vm855_vm0, %v6475_v10 }
 0x48f   :  { %5814 = vmatprep.subr.bf16.mxu0 %v2811_v40 }
 0x491   :  { %v2226_v4 = vpop.permute.xlu1 %2225 }
 0x492   :  { %5815 = vmatpush3.bf16.msra.mxu0 %v2811_v40  ;;  %v6494_v40 = vld [vmem:[%s7771_s8] sm:$0xff]  }
 0x493   :  { %5816 = vmatprep.subr.bf16.mxu0 %v2813_v15 }
 0x495   :  { %5809 = vmatmul.mubr.msk.bf16.gmra.mrb[52].mxu0 %vm855_vm0, %v6476_v2  ;;  %v2236_v6 = vpop.permute.xlu1 %2235 }
 0x496   :  { %5817 = vmatpush3.bf16.msra.mxu0 %v2813_v15  ;;  %5820 = vmatprep.mubr.msk.bf16.mxu0 %vm855_vm0, %v6477_v23 }
 0x497   :  { %5818 = vmatprep.subr.bf16.mxu0 %v2815_v41 }
 0x499   :  { %v2231_v5 = vpop.permute.xlu0 %2230  ;;  %v2246_v12 = vpop.permute.xlu1 %2245 }
 0x49a   :  { %5819 = vmatpush3.bf16.msra.mxu0 %v2815_v41 }
 0x49b   :  { %5828 = vmatprep.subr.bf16.mxu0 %v2935_v44 }
 0x49d   :  { %5821 = vmatmul.mubr.msk.bf16.vlgmr.msra.gmra.mrb[48].mxu0 %vm855_vm0, %v6478_v29  ;;  %v2241_v7 = vpop.permute.xlu0 %2240  ;;  %v2256_v25 = vpop.permute.xlu1 %2255 }
 0x49e   :  { %5829 = vmatpush3.bf16.msra.mxu0 %v2935_v44  ;;  %5824 = vmatprep.mubr.msk.bf16.mxu0 %vm855_vm0, %v6479_v45 }
 0x49f   :  { %5830 = vmatprep.subr.bf16.mxu0 %v2937_v47 }
 0x4a1   :  { %v2251_v18 = vpop.permute.xlu0 %2250 }
 0x4a2   :  { %5831 = vmatpush3.bf16.msra.mxu0 %v2937_v47 }
 0x4a3   :  { %5832 = vmatprep.subr.bf16.mxu0 %v2939_v36 }
 0x4a5   :  { %5825 = vmatmul.mubr.msk.bf16.gmra.mrb[52].mxu0 %vm855_vm0, %v6480_v48  ;;  %v2261_v31 = vpop.permute.xlu0 %2260 }
 0x4a6   :  { %5833 = vmatpush3.bf16.msra.mxu0 %v2939_v36  ;;  %5836 = vmatprep.mubr.msk.bf16.mxu0 %vm855_vm0, %v6481_v49 }
 0x4a7   :  { %5834 = vmatprep.subr.bf16.mxu0 %v2941_v50 }
 0x4aa   :  { %5835 = vmatpush3.bf16.msra.mxu0 %v2941_v50 }
 0x4ab   :  { %5844 = vmatprep.subr.bf16.mxu0 %v3061_v53 }
 0x4ad   :  { %5837 = vmatmul.mubr.msk.bf16.vlgmr.msra.gmra.mrb[48].mxu0 %vm855_vm0, %v6482_v51  ;;  %v6495_v51 = vld [vmem:[%s7771_s8 + $0x8] sm:$0xff]  }
 0x4ae   :  { %5845 = vmatpush3.bf16.msra.mxu0 %v3061_v53  ;;  %5840 = vmatprep.mubr.msk.bf16.mxu0 %vm855_vm0, %v6483_v54  ;;  %v6496_v53 = vld [vmem:[%s7771_s8 + $0x10] sm:$0xff]   ;;  %v6497_v54 = vld [vmem:[%s7771_s8 + $0x18] sm:$0xff]  }
 0x4af   :  { %5846 = vmatprep.subr.bf16.mxu0 %v3063_v56 }
 0x4b2   :  { %5847 = vmatpush3.bf16.msra.mxu0 %v3063_v56  ;;  %v6498_v56 = vld [vmem:[%s7771_s8 + $0x20] sm:$0xff]  }
 0x4b3   :  { %5848 = vmatprep.subr.bf16.mxu0 %v3065_v59 }
 0x4b5   :  { %5841 = vmatmul.mubr.msk.bf16.gmra.mrb[52].mxu0 %vm855_vm0, %v6484_v57  ;;  %v3374_v57 = vld [vmem:[%s7772_s9 + $0x8] sm:$0xff] }
 0x4b6   :  { %5849 = vmatpush3.bf16.msra.mxu0 %v3065_v59  ;;  %5852 = vmatprep.mubr.msk.bf16.mxu0 %vm855_vm0, %v6485_v60  ;;  %v3373_v59 = vld [vmem:[%s7772_s9] sm:$0xff]  ;;  %v3376_v60 = vld [vmem:[%s7772_s9 + $0x18] sm:$0xff] }
 0x4b7   :  { %5850 = vmatprep.subr.bf16.mxu0 %v3067_v61 }
 0x4ba   :  { %5851 = vmatpush3.bf16.msra.mxu0 %v3067_v61  ;;  %v3375_v61 = vld [vmem:[%s7772_s9 + $0x10] sm:$0xff] }
 0x4bb   :  { %5860 = vmatprep.subr.bf16.mxu0 %v7280_v17 }
 0x4bd   :  { %5853 = vmatmul.mubr.msk.bf16.vlgmr.msra.gmra.mrb[48].mxu0 %vm855_vm0, %v6486_v62  ;;  %v4555_v62 = vld [vmem:[%s7773_s10 + $0x8] sm:$0xff] }
 0x4be   :  { %5861 = vmatpush3.bf16.msra.mxu0 %v7280_v17  ;;  %5856 = vmatprep.mubr.msk.bf16.mxu0 %vm855_vm0, %v6487_v63  ;;  %v6490_v17 = vld [vmem:[%s7768_s5 + $0x108] sm:$0xff]   ;;  %v4554_v63 = vld [vmem:[%s7773_s10] sm:$0xff] }
 0x4bf   :  { %5862 = vmatprep.subr.bf16.mxu0 %v7286_v43 }
 0x4c2   :  { %5863 = vmatpush3.bf16.msra.mxu0 %v7286_v43  ;;  %v6491_v43 = vld [vmem:[%s7768_s5 + $0x110] sm:$0xff]  }
 0x4c3   :  { %5864 = vmatprep.subr.bf16.mxu0 %v7289_v42 }
 0x4c5   :  { %5857 = vmatmul.mubr.msk.bf16.gmra.mrb[52].mxu0 %vm855_vm0, %v6488_v1  ;;  %v4611_v1 = vld [vmem:[%s7774_s11 + $0x8] sm:$0xff] }
 0x4c6   :  { %5865 = vmatpush3.bf16.msra.mxu0 %v7289_v42  ;;  %5868 = vmatprep.mubr.msk.bf16.mxu0 %vm855_vm0, %v6489_v3  ;;  %v6492_v42 = vld [vmem:[%s7768_s5 + $0x118] sm:$0xff]   ;;  %v4610_v3 = vld [vmem:[%s7774_s11] sm:$0xff] }
 0x4c7   :  { %5866 = vmatprep.subr.bf16.mxu0 %v7294_v55 }
 0x4ca   :  { %5867 = vmatpush3.bf16.msra.mxu0 %v7294_v55 }
 0x4cd   :  { %5869 = vmatmul.mubr.msk.bf16.vlgmr.msra.gmra.mrb[48].mxu0 %vm855_vm0, %v6490_v17  ;;  %v3378_v17 = vld [vmem:[%s7772_s9 + $0x28] sm:$0xff] }
 0x4ce   :  { %5872 = vmatprep.mubr.msk.bf16.mxu0 %vm855_vm0, %v6491_v43  ;;  %v3377_v43 = vld [vmem:[%s7772_s9 + $0x20] sm:$0xff] }
 0x4d5   :  { %5873 = vmatmul.mubr.msk.bf16.gmra.mrb[52].mxu0 %vm855_vm0, %v6492_v42  ;;  %v4557_v42 = vld [vmem:[%s7773_s10 + $0x18] sm:$0xff] }
 0x5a0   :  { %v5870_v9 = vpop.f32.mrb[48].mxu0 }
 0x5a1   :  { %v6069_v55 = vadd.f32 %v5870_v9, %v2236_v6  ;;  %v3232_v11 = vpop.f32.mrb[49].mxu0  ;;  %v4612_v6 = vld [vmem:[%s7774_s11 + $0x10] sm:$0xff] }
 0x5a2   :  { %v6070_v13 = vadd.f32 %v3232_v11, %v2226_v4  ;;  %v5871_v16 = vpop.f32.mrb[50].mxu0  ;;  %v4556_v4 = vld [vmem:[%s7773_s10 + $0x10] sm:$0xff]  ;;  %v4558_v11 = vld [vmem:[%s7773_s10 + $0x20] sm:$0xff] }
 0x5a3   :  { %v6071_v46 = vadd.f32 %v5871_v16, %v2241_v7  ;;  %v3235_v52 = vpop.f32.mrb[51].mxu0  ;;  %v3273_v20 = vmax.f32 %v6069_v55, 0.0  ;;  %v3380_v7 = vld [vmem:[%s7772_s9 + $0x38] sm:$0xff]  ;;  %v3379_v9 = vld [vmem:[%s7772_s9 + $0x30] sm:$0xff]  ;;  %v4559_v55 = vld [vmem:[%s7773_s10 + $0x28] sm:$0xff] }
 0x5a4   :  { %v6072_v19 = vadd.f32 %v3235_v52, %v2231_v5  ;;  %v3271_v22 = vmax.f32 %v6070_v13, 0.0  ;;  %v4613_v5 = vld [vmem:[%s7774_s11 + $0x18] sm:$0xff]  ;;  %v4614_v13 = vld [vmem:[%s7774_s11 + $0x20] sm:$0xff] }
 0x5a5   :  { %v3274_v58 = vmax.f32 %v6071_v46, 0.0  ;;  %v4561_v16 = vld [vmem:[%s7773_s10 + $0x38] sm:$0xff]  ;;  %v4560_v46 = vld [vmem:[%s7773_s10 + $0x30] sm:$0xff] }
 0x5a6   :  { %v3272_v0 = vmax.f32 %v6072_v19, 0.0  ;;  %v4617_v52 = vld [vmem:[%s7774_s11 + $0x38] sm:$0xff] }
 0x5a7   :  { %v3280_v24 = vpack.c.bf16 %v3274_v58, %v3273_v20 }
 0x5a8   :  { %v3279_v26 = vpack.c.bf16 %v3272_v0, %v3271_v22  ;;  %v5874_v28 = vpop.f32.mrb[52].mxu0  ;;  %v6499_v0 = vld [vmem:[%s7771_s8 + $0x28] sm:$0xff]  }
 0x5a9   :  { %v6073_v30 = vadd.f32 %v5874_v28, %v2256_v25  ;;  %v3248_v8 = vpop.f32.mrb[53].mxu0  ;;  %v6500_v25 = vld [vmem:[%s7771_s8 + $0x30] sm:$0xff]   ;;  %v6501_v28 = vld [vmem:[%s7771_s8 + $0x38] sm:$0xff]  }
 0x5aa   :  { %v6074_v14 = vadd.f32 %v3248_v8, %v2246_v12  ;;  %v5875_v32 = vpop.f32.mrb[54].mxu0  ;;  %5878 = vmatprep.mubr.msk.bf16.mxu1 %vm3291_vm1, %v3279_v26  ;;  %v4615_v12 = vld [vmem:[%s7774_s11 + $0x28] sm:$0xff]  ;;  %v6502_v8 = vld [vmem:[%s7771_s8 + $0x40] sm:$0xff]  }
 0x5ab   :  { %v6075_v21 = vadd.f32 %v5875_v32, %v2261_v31  ;;  %v3251_v33 = vpop.f32.mrb[55].mxu0  ;;  %5879 = vmatmul.mubr.msk.bf16.vlgmr.msra.gmra.mrb[24].mxu1 %vm3291_vm1, %v3280_v24  ;;  %v3277_v34 = vmax.f32 %v6073_v30, 0.0 }
 0x5ac   :  { %v6076_v27 = vadd.f32 %v3251_v33, %v2251_v18  ;;  %v3275_v37 = vmax.f32 %v6074_v14, 0.0  ;;  %v4616_v18 = vld [vmem:[%s7774_s11 + $0x30] sm:$0xff]  ;;  %v6503_v14 = vld [vmem:[%s7771_s8 + $0x48] sm:$0xff]  }
 0x5ad   :  { %v3278_v35 = vmax.f32 %v6075_v21, 0.0  ;;  %v6504_v21 = vld [vmem:[%s7771_s8 + $0x50] sm:$0xff]  }
 0x5ae   :  { %v3276_v38 = vmax.f32 %v6076_v27, 0.0  ;;  %v6505_v27 = vld [vmem:[%s7771_s8 + $0x58] sm:$0xff]  }
 0x5af   :  { %v3282_v39 = vpack.c.bf16 %v3278_v35, %v3277_v34  ;;  %v6506_v35 = vld [vmem:[%s7771_s8 + $0x60] sm:$0xff]  }
 0x5b0   :  { %v3281_v10 = vpack.c.bf16 %v3276_v38, %v3275_v37  ;;  %v6507_v38 = vld [vmem:[%s7771_s8 + $0x68] sm:$0xff]  }
 0x5b2   :  { %5882 = vmatprep.mubr.msk.bf16.mxu1 %vm3291_vm1, %v3281_v10  ;;  %v6508_v10 = vld [vmem:[%s7771_s8 + $0x70] sm:$0xff]  }
 0x5b3   :  { %5883 = vmatmul.mubr.msk.bf16.gmra.mrb[28].mxu1 %vm3291_vm1, %v3282_v39 }
 0x5b4   :  { %5894 = vmatprep.mubr.msk.bf16.mxu1 %vm855_vm0, %v6494_v40 }
 0x67e   :  { %v5880_v2 = vpop.f32.mrb[24].mxu1 }
 0x67f   :  { %v3338_v15 = vpop.f32.mrb[25].mxu1 }
 0x680   :  { %v5881_v23 = vpop.f32.mrb[26].mxu1 }
 0x681   :  { %v3370_v41 = vpack.c.bf16 %v5881_v23, %v5880_v2  ;;  %v3341_v29 = vpop.f32.mrb[27].mxu1  ;;  %v6509_v2 = vld [vmem:[%s7771_s8 + $0x78] sm:$0xff]   ;;  %v6510_v23 = vld [vmem:[%s7771_s8 + $0x80] sm:$0xff]  }
 0x682   :  { %v3369_v44 = vpack.c.bf16 %v3341_v29, %v3338_v15  ;;  %v6511_v29 = vld [vmem:[%s7771_s8 + $0x88] sm:$0xff]  }
 0x683   :  { %3569 = vrot.lane.b32.xlu0 %v3370_v41, %s6562_s27 }
 0x684   :  { %3567 = vrot.lane.b32.xlu1 %v3369_v44, %s6562_s27  ;;  %5886 = vmatprep.subr.bf16.mxu1 %v3369_v44 }
 0x685   :  { %5887 = vmatpush3.bf16.msra.mxu1 %v3369_v44 }
 0x686   :  { %v5884_v45 = vpop.f32.mrb[28].mxu1  ;;  %5888 = vmatprep.subr.bf16.mxu1 %v3370_v41 }
 0x687   :  { %v3354_v47 = vpop.f32.mrb[29].mxu1 }
 0x688   :  { %v5885_v48 = vpop.f32.mrb[30].mxu1 }
 0x689   :  { %v3372_v36 = vpack.c.bf16 %v5885_v48, %v5884_v45  ;;  %v3357_v49 = vpop.f32.mrb[31].mxu1  ;;  %5889 = vmatpush3.bf16.msra.mxu1 %v3370_v41  ;;  %v6512_v45 = vld [vmem:[%s7771_s8 + $0x90] sm:$0xff]   ;;  %v6513_v48 = vld [vmem:[%s7771_s8 + $0x98] sm:$0xff]  }
 0x68a   :  { %v3371_v50 = vpack.c.bf16 %v3357_v49, %v3354_v47  ;;  %v6514_v49 = vld [vmem:[%s7771_s8 + $0xa0] sm:$0xff]  }
 0x68b   :  { %3573 = vrot.lane.b32.xlu0 %v3372_v36, %s6562_s27 }
 0x68c   :  { %3571 = vrot.lane.b32.xlu1 %v3371_v50, %s6562_s27  ;;  %5890 = vmatprep.subr.bf16.mxu1 %v3371_v50 }
 0x68d   :  { %5891 = vmatpush3.bf16.msra.mxu1 %v3371_v50 }
 0x68e   :  { %5892 = vmatprep.subr.bf16.mxu1 %v3372_v36 }
 0x68f   :  { %3695 = vrot.lane.b32.xlu0 %v3370_v41, %s6563_s7 }
 0x690   :  { %3693 = vrot.lane.b32.xlu1 %v3369_v44, %s6563_s7 }
 0x691   :  { %5893 = vmatpush3.bf16.msra.mxu1 %v3372_v36 }
 0x693   :  { %3699 = vrot.lane.b32.xlu0 %v3372_v36, %s6563_s7 }
 0x694   :  { %3697 = vrot.lane.b32.xlu1 %v3371_v50, %s6563_s7  ;;  %5895 = vmatmul.mubr.msk.bf16.vlgmr.msra.gmra.mrb[32].mxu1 %vm855_vm0, %v6495_v51  ;;  %v6515_v51 = vld [vmem:[%s7771_s8 + $0xa8] sm:$0xff]  }
 0x695   :  { %5898 = vmatprep.mubr.msk.bf16.mxu1 %vm855_vm0, %v6496_v53 }
 0x697   :  { %3821 = vrot.lane.b32.xlu0 %v3370_v41, %s6564_s16 }
 0x698   :  { %3819 = vrot.lane.b32.xlu1 %v3369_v44, %s6564_s16 }
 0x69b   :  { %3825 = vrot.lane.b32.xlu0 %v3372_v36, %s6564_s16 }
 0x69c   :  { %3823 = vrot.lane.b32.xlu1 %v3371_v50, %s6564_s16  ;;  %5899 = vmatmul.mubr.msk.bf16.gmra.mrb[36].mxu1 %vm855_vm0, %v6497_v54  ;;  %v6516_v54 = vld [vmem:[%s7771_s8 + $0xb0] sm:$0xff]  }
 0x69d   :  { %5910 = vmatprep.mubr.msk.bf16.mxu1 %vm855_vm0, %v6498_v56 }
 0x69f   :  { %3947 = vrot.lane.b32.xlu0 %v3370_v41, %s6556_s28 }
 0x6a0   :  { %3945 = vrot.lane.b32.xlu1 %v3369_v44, %s6556_s28 }
 0x6a3   :  { %3951 = vrot.lane.b32.xlu0 %v3372_v36, %s6556_s28 }
 0x6a4   :  { %3949 = vrot.lane.b32.xlu1 %v3371_v50, %s6556_s28 }
 0x6a7   :  { %4073 = vrot.lane.b32.xlu0 %v3370_v41, %s6565_s21 }
 0x6a8   :  { %4071 = vrot.lane.b32.xlu1 %v3369_v44, %s6565_s21 }
 0x6ab   :  { %4077 = vrot.lane.b32.xlu0 %v3372_v36, %s6565_s21 }
 0x6ac   :  { %4075 = vrot.lane.b32.xlu1 %v3371_v50, %s6565_s21 }
 0x6af   :  { %4199 = vrot.lane.b32.xlu0 %v3370_v41, %s6566_s22 }
 0x6b0   :  { %4197 = vrot.lane.b32.xlu1 %v3369_v44, %s6566_s22 }
 0x6b3   :  { %4203 = vrot.lane.b32.xlu0 %v3372_v36, %s6566_s22 }
 0x6b4   :  { %4201 = vrot.lane.b32.xlu1 %v3371_v50, %s6566_s22 }
 0x6b7   :  { %4325 = vrot.lane.b32.xlu0 %v3370_v41, %s6567_s23 }
 0x6b8   :  { %4323 = vrot.lane.b32.xlu1 %v3369_v44, %s6567_s23 }
 0x6bb   :  { %4329 = vrot.lane.b32.xlu0 %v3372_v36, %s6567_s23 }
 0x6bc   :  { %4327 = vrot.lane.b32.xlu1 %v3371_v50, %s6567_s23 }
 0x6bf   :  { %4451 = vrot.lane.b32.xlu0 %v3370_v41, %s6557_s29 }
 0x6c0   :  { %4449 = vrot.lane.b32.xlu1 %v3369_v44, %s6557_s29 }
 0x6c3   :  { %4455 = vrot.lane.b32.xlu0 %v3372_v36, %s6557_s29 }
 0x6c4   :  { %4453 = vrot.lane.b32.xlu1 %v3371_v50, %s6557_s29 }
 0x6c7   :  { %3493 = vperm.xlu0 %6295, %v3374_v57   ;;  %v6517_v57 = vld [vmem:[%s7771_s8 + $0xb8] sm:$0xff]  }
 0x6c8   :  { %3488 = vperm.xlu1 %6296, %v3373_v59  }
 0x6cb   :  { %3503 = vperm.xlu0 %6295, %v3376_v60   ;;  %v6518_v60 = vld [vmem:[%s7771_s8 + $0xc0] sm:$0xff]  }
 0x6cc   :  { %3498 = vperm.xlu1 %6296, %v3375_v61  }
 0x6cf   :  { %4569 = vperm.xlu0 %6295, %v4555_v62   ;;  %v6519_v62 = vld [vmem:[%s7771_s8 + $0xc8] sm:$0xff]  }
 0x6d0   :  { %4564 = vperm.xlu1 %6296, %v4554_v63  }
 0x6d3   :  { %4625 = vperm.xlu0 %6295, %v4611_v1   ;;  %v6520_v1 = vld [vmem:[%s7771_s8 + $0xd0] sm:$0xff]  }
 0x6d4   :  { %4620 = vperm.xlu1 %6296, %v4610_v3  }
 0x6d7   :  { %3513 = vperm.xlu0 %6295, %v3378_v17   ;;  %v6521_v17 = vld [vmem:[%s7771_s8 + $0xd8] sm:$0xff]  }
 0x6d8   :  { %3508 = vperm.xlu1 %6296, %v3377_v43  }
 0x6db   :  { %4579 = vperm.xlu0 %6295, %v4557_v42   ;;  %v6522_v42 = vld [vmem:[%s7771_s8 + $0xe0] sm:$0xff]  }
 0x6dc   :  { %4574 = vperm.xlu1 %6296, %v4556_v4  }
 0x6df   :  { %4635 = vperm.xlu0 %6295, %v4613_v5   ;;  %v6523_v5 = vld [vmem:[%s7771_s8 + $0xe8] sm:$0xff]  }
 0x6e0   :  { %4630 = vperm.xlu1 %6296, %v4612_v6  }
 0x6e3   :  { %3523 = vperm.xlu0 %6295, %v3380_v7   ;;  %v6524_v7 = vld [vmem:[%s7771_s8 + $0xf0] sm:$0xff]  }
 0x6e4   :  { %3518 = vperm.xlu1 %6296, %v3379_v9  }
 0x6e7   :  { %4589 = vperm.xlu0 %6295, %v4559_v55   ;;  %v6525_v55 = vld [vmem:[%s7771_s8 + $0xf8] sm:$0xff]  }
 0x6e8   :  { %4584 = vperm.xlu1 %6296, %v4558_v11  }
 0x6eb   :  { %4645 = vperm.xlu0 %6295, %v4615_v12   ;;  %v6526_v12 = vld [vmem:[%s7771_s8 + $0x100] sm:$0xff]  }
 0x6ec   :  { %4640 = vperm.xlu1 %6296, %v4614_v13  }
 0x6ef   :  { %4599 = vperm.xlu0 %6295, %v4561_v16   ;;  %v6527_v16 = vld [vmem:[%s7771_s8 + $0x108] sm:$0xff]  }
 0x6f0   :  { %4594 = vperm.xlu1 %6296, %v4560_v46   ;;  %v6528_v46 = vld [vmem:[%s7771_s8 + $0x110] sm:$0xff]  }
 0x6f3   :  { %4655 = vperm.xlu0 %6295, %v4617_v52   ;;  %v6529_v52 = vld [vmem:[%s7771_s8 + $0x118] sm:$0xff]  }
 0x6f4   :  { %4650 = vperm.xlu1 %6296, %v4616_v18  }
 0x6f5   :  { %v3570_v20 = vpop.permute.xlu0 %3569 }
 0x6f6   :  { %v3568_v19 = vpop.permute.xlu1 %3567 }
 0x6f7   :  { %5902 = vmatprep.subr.bf16.mxu1 %v3568_v19 }
 0x6f8   :  { %5903 = vmatpush3.bf16.msra.mxu1 %v3568_v19 }
 0x6f9   :  { %5904 = vmatprep.subr.bf16.mxu1 %v3570_v20 }
 0x6fc   :  { %5905 = vmatpush3.bf16.msra.mxu1 %v3570_v20 }
 0x6fd   :  { %v3574_v22 = vpop.permute.xlu0 %3573 }
 0x6fe   :  { %v3572_v58 = vpop.permute.xlu1 %3571 }
 0x6ff   :  { %5906 = vmatprep.subr.bf16.mxu1 %v3572_v58 }
 0x700   :  { %5907 = vmatpush3.bf16.msra.mxu1 %v3572_v58 }
 0x701   :  { %5908 = vmatprep.subr.bf16.mxu1 %v3574_v22  ;;  %v3696_v26 = vpop.permute.xlu0 %3695 }
 0x702   :  { %v3694_v24 = vpop.permute.xlu1 %3693 }
 0x704   :  { %5909 = vmatpush3.bf16.msra.mxu1 %v3574_v22 }
 0x705   :  { %5918 = vmatprep.subr.bf16.mxu1 %v3694_v24  ;;  %v3700_v31 = vpop.permute.xlu0 %3699 }
 0x706   :  { %v3698_v30 = vpop.permute.xlu1 %3697 }
 0x707   :  { %5911 = vmatmul.mubr.msk.bf16.vlgmr.msra.gmra.mrb[32].mxu1 %vm855_vm0, %v6499_v0 }
 0x708   :  { %5919 = vmatpush3.bf16.msra.mxu1 %v3694_v24  ;;  %5914 = vmatprep.mubr.msk.bf16.mxu1 %vm855_vm0, %v6500_v25 }
 0x709   :  { %5920 = vmatprep.subr.bf16.mxu1 %v3696_v26  ;;  %v3822_v33 = vpop.permute.xlu0 %3821 }
 0x70a   :  { %v3820_v32 = vpop.permute.xlu1 %3819 }
 0x70c   :  { %5921 = vmatpush3.bf16.msra.mxu1 %v3696_v26 }
 0x70d   :  { %5922 = vmatprep.subr.bf16.mxu1 %v3698_v30  ;;  %v3826_v37 = vpop.permute.xlu0 %3825 }
 0x70e   :  { %v3824_v34 = vpop.permute.xlu1 %3823 }
 0x70f   :  { %5915 = vmatmul.mubr.msk.bf16.gmra.mrb[36].mxu1 %vm855_vm0, %v6501_v28 }
 0x710   :  { %5923 = vmatpush3.bf16.msra.mxu1 %v3698_v30  ;;  %5926 = vmatprep.mubr.msk.bf16.mxu1 %vm855_vm0, %v6502_v8 }
 0x711   :  { %5924 = vmatprep.subr.bf16.mxu1 %v3700_v31  ;;  %v3948_v40 = vpop.permute.xlu0 %3947 }
 0x712   :  { %v3946_v39 = vpop.permute.xlu1 %3945 }
 0x714   :  { %5925 = vmatpush3.bf16.msra.mxu1 %v3700_v31 }
 0x715   :  { %5934 = vmatprep.subr.bf16.mxu1 %v3820_v32  ;;  %v3952_v41 = vpop.permute.xlu0 %3951 }
 0x716   :  { %v3950_v15 = vpop.permute.xlu1 %3949 }
 0x717   :  { %5927 = vmatmul.mubr.msk.bf16.vlgmr.msra.gmra.mrb[32].mxu1 %vm855_vm0, %v6503_v14 }
 0x718   :  { %5935 = vmatpush3.bf16.msra.mxu1 %v3820_v32  ;;  %5930 = vmatprep.mubr.msk.bf16.mxu1 %vm855_vm0, %v6504_v21 }
 0x719   :  { %5936 = vmatprep.subr.bf16.mxu1 %v3822_v33  ;;  %v4074_v47 = vpop.permute.xlu0 %4073 }
 0x71a   :  { %v4072_v44 = vpop.permute.xlu1 %4071 }
 0x71c   :  { %5937 = vmatpush3.bf16.msra.mxu1 %v3822_v33 }
 0x71d   :  { %5938 = vmatprep.subr.bf16.mxu1 %v3824_v34  ;;  %v4078_v50 = vpop.permute.xlu0 %4077 }
 0x71e   :  { %v4076_v36 = vpop.permute.xlu1 %4075 }
 0x71f   :  { %5931 = vmatmul.mubr.msk.bf16.gmra.mrb[36].mxu1 %vm855_vm0, %v6505_v27 }
 0x720   :  { %5939 = vmatpush3.bf16.msra.mxu1 %v3824_v34  ;;  %5942 = vmatprep.mubr.msk.bf16.mxu1 %vm855_vm0, %v6506_v35 }
 0x721   :  { %5940 = vmatprep.subr.bf16.mxu1 %v3826_v37  ;;  %v4200_v56 = vpop.permute.xlu0 %4199 }
 0x722   :  { %v4198_v53 = vpop.permute.xlu1 %4197 }
 0x724   :  { %5941 = vmatpush3.bf16.msra.mxu1 %v3826_v37 }
 0x725   :  { %5950 = vmatprep.subr.bf16.mxu1 %v3946_v39  ;;  %v4204_v61 = vpop.permute.xlu0 %4203 }
 0x726   :  { %v4202_v59 = vpop.permute.xlu1 %4201 }
 0x727   :  { %5943 = vmatmul.mubr.msk.bf16.vlgmr.msra.gmra.mrb[32].mxu1 %vm855_vm0, %v6507_v38 }
 0x728   :  { %5951 = vmatpush3.bf16.msra.mxu1 %v3946_v39  ;;  %5946 = vmatprep.mubr.msk.bf16.mxu1 %vm855_vm0, %v6508_v10 }
 0x729   :  { %5952 = vmatprep.subr.bf16.mxu1 %v3948_v40  ;;  %v4326_v3 = vpop.permute.xlu0 %4325 }
 0x72a   :  { %v4324_v63 = vpop.permute.xlu1 %4323 }
 0x72c   :  { %5953 = vmatpush3.bf16.msra.mxu1 %v3948_v40 }
 0x72d   :  { %5954 = vmatprep.subr.bf16.mxu1 %v3950_v15  ;;  %v4330_v4 = vpop.permute.xlu0 %4329 }
 0x72e   :  { %v4328_v43 = vpop.permute.xlu1 %4327 }
 0x72f   :  { %5947 = vmatmul.mubr.msk.bf16.gmra.mrb[36].mxu1 %vm855_vm0, %v6509_v2 }
 0x730   :  { %5955 = vmatpush3.bf16.msra.mxu1 %v3950_v15  ;;  %5958 = vmatprep.mubr.msk.bf16.mxu1 %vm855_vm0, %v6510_v23 }
 0x731   :  { %5956 = vmatprep.subr.bf16.mxu1 %v3952_v41  ;;  %v4452_v9 = vpop.permute.xlu0 %4451 }
 0x732   :  { %v4450_v6 = vpop.permute.xlu1 %4449 }
 0x734   :  { %5957 = vmatpush3.bf16.msra.mxu1 %v3952_v41 }
 0x735   :  { %5966 = vmatprep.subr.bf16.mxu1 %v4072_v44  ;;  %v4456_v13 = vpop.permute.xlu0 %4455 }
 0x736   :  { %v4454_v11 = vpop.permute.xlu1 %4453 }
 0x737   :  { %5959 = vmatmul.mubr.msk.bf16.vlgmr.msra.gmra.mrb[32].mxu1 %vm855_vm0, %v6511_v29 }
 0x738   :  { %5967 = vmatpush3.bf16.msra.mxu1 %v4072_v44  ;;  %5962 = vmatprep.mubr.msk.bf16.mxu1 %vm855_vm0, %v6512_v45 }
 0x739   :  { %5968 = vmatprep.subr.bf16.mxu1 %v4074_v47 }
 0x73c   :  { %5969 = vmatpush3.bf16.msra.mxu1 %v4074_v47 }
 0x73d   :  { %5970 = vmatprep.subr.bf16.mxu1 %v4076_v36 }
 0x73f   :  { %5963 = vmatmul.mubr.msk.bf16.gmra.mrb[36].mxu1 %vm855_vm0, %v6513_v48 }
 0x740   :  { %5971 = vmatpush3.bf16.msra.mxu1 %v4076_v36  ;;  %5974 = vmatprep.mubr.msk.bf16.mxu1 %vm855_vm0, %v6514_v49 }
 0x741   :  { %5972 = vmatprep.subr.bf16.mxu1 %v4078_v50 }
 0x744   :  { %5973 = vmatpush3.bf16.msra.mxu1 %v4078_v50 }
 0x745   :  { %5982 = vmatprep.subr.bf16.mxu1 %v4198_v53 }
 0x746   :  { %v3494_v18 = vpop.permute.xlu0 %3493 }
 0x747   :  { %5975 = vmatmul.mubr.msk.bf16.vlgmr.msra.gmra.mrb[32].mxu1 %vm855_vm0, %v6515_v51  ;;  %v3489_v19 = vpop.permute.xlu1 %3488 }
 0x748   :  { %5983 = vmatpush3.bf16.msra.mxu1 %v4198_v53  ;;  %5978 = vmatprep.mubr.msk.bf16.mxu1 %vm855_vm0, %v6516_v54 }
 0x749   :  { %5984 = vmatprep.subr.bf16.mxu1 %v4200_v56 }
 0x74a   :  { %v3504_v20 = vpop.permute.xlu0 %3503 }
 0x74b   :  { %v3499_v58 = vpop.permute.xlu1 %3498 }
 0x74c   :  { %5985 = vmatpush3.bf16.msra.mxu1 %v4200_v56 }
 0x74d   :  { %5986 = vmatprep.subr.bf16.mxu1 %v4202_v59 }
 0x74e   :  { %v4570_v22 = vpop.permute.xlu0 %4569 }
 0x74f   :  { %5979 = vmatmul.mubr.msk.bf16.gmra.mrb[36].mxu1 %vm855_vm0, %v6517_v57  ;;  %v4565_v0 = vpop.permute.xlu1 %4564 }
 0x750   :  { %5987 = vmatpush3.bf16.msra.mxu1 %v4202_v59  ;;  %5990 = vmatprep.mubr.msk.bf16.mxu1 %vm855_vm0, %v6518_v60 }
 0x751   :  { %5988 = vmatprep.subr.bf16.mxu1 %v4204_v61 }
 0x752   :  { %v4626_v24 = vpop.permute.xlu0 %4625 }
 0x753   :  { %v4621_v25 = vpop.permute.xlu1 %4620 }
 0x754   :  { %5989 = vmatpush3.bf16.msra.mxu1 %v4204_v61 }
 0x755   :  { %5998 = vmatprep.subr.bf16.mxu1 %v4324_v63 }
 0x756   :  { %v3514_v26 = vpop.permute.xlu0 %3513 }
 0x757   :  { %5991 = vmatmul.mubr.msk.bf16.vlgmr.msra.gmra.mrb[32].mxu1 %vm855_vm0, %v6519_v62  ;;  %v3509_v28 = vpop.permute.xlu1 %3508 }
 0x758   :  { %5999 = vmatpush3.bf16.msra.mxu1 %v4324_v63  ;;  %5994 = vmatprep.mubr.msk.bf16.mxu1 %vm855_vm0, %v6520_v1 }
 0x759   :  { %6000 = vmatprep.subr.bf16.mxu1 %v4326_v3 }
 0x75a   :  { %v4580_v30 = vpop.permute.xlu0 %4579 }
 0x75b   :  { %v4575_v8 = vpop.permute.xlu1 %4574 }
 0x75c   :  { %6001 = vmatpush3.bf16.msra.mxu1 %v4326_v3 }
 0x75d   :  { %6002 = vmatprep.subr.bf16.mxu1 %v4328_v43 }
 0x75e   :  { %v4636_v31 = vpop.permute.xlu0 %4635 }
 0x75f   :  { %5995 = vmatmul.mubr.msk.bf16.gmra.mrb[36].mxu1 %vm855_vm0, %v6521_v17  ;;  %v4631_v14 = vpop.permute.xlu1 %4630 }
 0x760   :  { %6003 = vmatpush3.bf16.msra.mxu1 %v4328_v43  ;;  %6006 = vmatprep.mubr.msk.bf16.mxu1 %vm855_vm0, %v6522_v42 }
 0x761   :  { %6004 = vmatprep.subr.bf16.mxu1 %v4330_v4 }
 0x762   :  { %v3524_v32 = vpop.permute.xlu0 %3523 }
 0x763   :  { %v3519_v21 = vpop.permute.xlu1 %3518 }
 0x764   :  { %6005 = vmatpush3.bf16.msra.mxu1 %v4330_v4 }
 0x765   :  { %6014 = vmatprep.subr.bf16.mxu1 %v4450_v6 }
 0x766   :  { %v4590_v33 = vpop.permute.xlu0 %4589 }
 0x767   :  { %6007 = vmatmul.mubr.msk.bf16.vlgmr.msra.gmra.mrb[32].mxu1 %vm855_vm0, %v6523_v5  ;;  %v4585_v27 = vpop.permute.xlu1 %4584 }
 0x768   :  { %6015 = vmatpush3.bf16.msra.mxu1 %v4450_v6  ;;  %6010 = vmatprep.mubr.msk.bf16.mxu1 %vm855_vm0, %v6524_v7 }
 0x769   :  { %6016 = vmatprep.subr.bf16.mxu1 %v4452_v9 }
 0x76a   :  { %v4646_v15 = vpop.permute.xlu0 %4645 }
 0x76b   :  { %v4641_v29 = vpop.permute.xlu1 %4640 }
 0x76c   :  { %6017 = vmatpush3.bf16.msra.mxu1 %v4452_v9 }
 0x76d   :  { %6018 = vmatprep.subr.bf16.mxu1 %v4454_v11 }
 0x76e   :  { %v4600_v59 = vpop.permute.xlu0 %4599 }
 0x76f   :  { %6011 = vmatmul.mubr.msk.bf16.gmra.mrb[36].mxu1 %vm855_vm0, %v6525_v55  ;;  %v4595_v1 = vpop.permute.xlu1 %4594 }
 0x770   :  { %6019 = vmatpush3.bf16.msra.mxu1 %v4454_v11  ;;  %6022 = vmatprep.mubr.msk.bf16.mxu1 %vm855_vm0, %v6526_v12 }
 0x771   :  { %6020 = vmatprep.subr.bf16.mxu1 %v4456_v13 }
 0x774   :  { %6021 = vmatpush3.bf16.msra.mxu1 %v4456_v13 }
 0x777   :  { %6023 = vmatmul.mubr.msk.bf16.vlgmr.msra.gmra.mrb[32].mxu1 %vm855_vm0, %v6527_v16 }
 0x778   :  { %6026 = vmatprep.mubr.msk.bf16.mxu1 %vm855_vm0, %v6528_v46 }
 0x77f   :  { %6027 = vmatmul.mubr.msk.bf16.gmra.mrb[36].mxu1 %vm855_vm0, %v6529_v52 }
 0x84a   :  { %v6024_v34 = vpop.f32.mrb[32].mxu1 }
 0x84b   :  { %v6077_v35 = vadd.f32 %v6024_v34, %v3499_v58  ;;  %v4507_v37 = vpop.f32.mrb[33].mxu1  ;;  %v4651_v58 = vpop.permute.xlu1 %4650  ;;  %v4699_v34 = vld [vmem:[%s7775_s12] sm:$0xff] }
 0x84c   :  { %v6078_v38 = vadd.f32 %v4507_v37, %v3489_v19  ;;  %v6025_v39 = vpop.f32.mrb[34].mxu1  ;;  %v4700_v37 = vld [vmem:[%s7775_s12 + $0x8] sm:$0xff] }
 0x84d   :  { %v4548_v10 = vmax.f32 %v6077_v35, 0.0  ;;  %v6079_v40 = vadd.f32 %v6025_v39, %v3504_v20  ;;  %v4510_v2 = vpop.f32.mrb[35].mxu1  ;;  %v4656_v20 = vpop.permute.xlu0 %4655 }
 0x84e   :  { %v4546_v23 = vmax.f32 %v6078_v38, 0.0  ;;  %v6080_v41 = vadd.f32 %v4510_v2, %v3494_v18 }
 0x84f   :  { %v4604_v44 = vmul.f32 %v4575_v8, %v4548_v10  ;;  %v4549_v45 = vmax.f32 %v6079_v40, 0.0  ;;  %v4702_v40 = vld [vmem:[%s7775_s12 + $0x18] sm:$0xff] }
 0x850   :  { %v4602_v47 = vmul.f32 %v4565_v0, %v4546_v23  ;;  %v4547_v48 = vmax.f32 %v6080_v41, 0.0 }
 0x851   :  { %v4605_v36 = vmul.f32 %v4580_v30, %v4549_v45  ;;  %v4660_v57 = vadd.f32 %v4631_v14, %v4604_v44  ;;  %v4703_v45 = vld [vmem:[%s7775_s12 + $0x20] sm:$0xff] }
 0x852   :  { %v4603_v49 = vmul.f32 %v4570_v22, %v4547_v48  ;;  %v6028_v50 = vpop.f32.mrb[36].mxu1  ;;  %v4658_v51 = vadd.f32 %v4621_v25, %v4602_v47  ;;  %v4704_v47 = vld [vmem:[%s7775_s12 + $0x28] sm:$0xff] }
 0x853   :  { %v6081_v53 = vadd.f32 %v6028_v50, %v3519_v21  ;;  %v4523_v54 = vpop.f32.mrb[37].mxu1  ;;  %v4661_v56 = vadd.f32 %v4636_v31, %v4605_v36  ;;  %v4668_v55 = vmax.f32 %v4660_v57, 0.0 }
 0x854   :  { %v6082_v60 = vadd.f32 %v4523_v54, %v3509_v28  ;;  %v6029_v61 = vpop.f32.mrb[38].mxu1  ;;  %v4666_v62 = vmax.f32 %v4658_v51, 0.0  ;;  %v4659_v63 = vadd.f32 %v4626_v24, %v4603_v49  ;;  %v4706_v54 = vld [vmem:[%s7775_s12 + $0x38] sm:$0xff] }
 0x855   :  { %v4552_v3 = vmax.f32 %v6081_v53, 0.0  ;;  %v6083_v17 = vadd.f32 %v6029_v61, %v3524_v32  ;;  %v4526_v43 = vpop.f32.mrb[39].mxu1  ;;  %v4669_v42 = vmax.f32 %v4661_v56, 0.0  ;;  %v4681_v22 = vsel %vm4674_vm2, %v4668_v55, 0.0  ;;  %v4705_v53 = vld [vmem:[%s7775_s12 + $0x30] sm:$0xff] }
 0x856   :  { %v4550_v4 = vmax.f32 %v6082_v60, 0.0  ;;  %v6084_v5 = vadd.f32 %v4526_v43, %v3514_v26  ;;  %v4675_v6 = vsel %vm4674_vm2, %v4666_v62, 0.0  ;;  %v4667_v7 = vmax.f32 %v4659_v63, 0.0  ;;  %v4715_v63 = vld [vmem:[%s7776_s13] sm:$0xff] }
 0x857   :  { %v4553_v9 = vmax.f32 %v6083_v17, 0.0  ;;  %4676 = vadd.xlane.f32.xlu1 %v4675_v6  ;;  %v4608_v11 = vmul.f32 %v4595_v1, %v4552_v3  ;;  %v4684_v18 = vsel %vm4674_vm2, %v4669_v42, 0.0  ;;  %v5316_v1 = vld [vmem:[%s7777_s14] ss:$0 sm:$0xff] }
 0x858   :  { %v4606_v12 = vmul.f32 %v4585_v27, %v4550_v4  ;;  %v4551_v13 = vmax.f32 %v6084_v5, 0.0  ;;  %v4678_v16 = vsel %vm4674_vm2, %v4667_v7, 0.0  ;;  %v6570_v27 = vmov 0.0  }
 0x859   :  { %v4609_v46 = vmul.f32 %v4600_v59, %v4553_v9  ;;  %4679 = vadd.xlane.f32.xlu0 %v4678_v16  ;;  %v4664_v25 = vadd.f32 %v4651_v58, %v4608_v11  ;;  %6046 = vmatprep.mubr.msk.f32.mxu0 %vm6569_vm3, %v6570_v27 }
 0x85a   :  { %v4607_v52 = vmul.f32 %v4590_v33, %v4551_v13  ;;  %v4662_v19 = vadd.f32 %v4641_v29, %v4606_v12  ;;  %v6568_v33 = vmov 0.0|0.0  }
 0x85b   :  { %4685 = vadd.xlane.f32.xlu1 %v4684_v18  ;;  %v4665_v26 = vadd.f32 %v4656_v20, %v4609_v46  ;;  %v4672_v31 = vmax.f32 %v4664_v25, 0.0  ;;  %6049 = vmatprep.subr.bf16.mxu0 %v6568_v33 }
 0x85c   :  { %v4670_v0 = vmax.f32 %v4662_v19, 0.0  ;;  %v4663_v24 = vadd.f32 %v4646_v15, %v4607_v52  ;;  %v4701_v15 = vld [vmem:[%s7775_s12 + $0x10] sm:$0xff]  ;;  %s6571_s12 = smov [#allocation2]  }
 0x85d   :  { %4682 = vadd.xlane.f32.xlu0 %v4681_v22  ;;  %v4673_v14 = vmax.f32 %v4665_v26, 0.0  ;;  %v4693_v32 = vsel %vm4674_vm2, %v4672_v31, 0.0  ;;  %s4803_s24 = sshll.u32 %s6571_s12, 4  ;;  %s4804_s24 = int_to_ptr.vmem [resolvable:$true] %s4803_s24 }
 0x85e   :  { %v4671_v28 = vmax.f32 %v4663_v24, 0.0  ;;  %v4687_v30 = vsel %vm4674_vm2, %v4670_v0, 0.0  ;;  %s6530_s25 = scalar_lea.vmem %s4804_s24, 128  ;;  %p6535_p1 = scmp.lt.s32.totalorder %s4804_s24, %s4804_s24 }
 0x85f   :  { %v4696_v21 = vsel %vm4674_vm2, %v4673_v14, 0.0  ;;  %p6531_p0 = scmp.ne.s32.totalorder %s4804_s24, %s6530_s25  ;;  %p6536_p2 = scmp.lt.s32.totalorder %s6530_s25, %s6530_s25 }
 0x860   :  { %v4690_v8 = vsel %vm4674_vm2, %v4671_v28, 0.0 }
 0x861   :  { %4688 = vadd.xlane.f32.xlu0 %v4687_v30  ;;  %4691 = vadd.xlane.f32.xlu1 %v4690_v8  ;;  %p6537_p3 = por %p6536_p2, %p6535_p1 }
 0x863   :  { %p6538_p4 = pnand %p6537_p3, %p6531_p0 }
 0x865   :  { %4694 = vadd.xlane.f32.xlu0 %v4693_v32  ;;  %4697 = vadd.xlane.f32.xlu1 %v4696_v21 }
 0x8e4   :  { %v4677_v35 = vpop.xlane.xlu1 %4676 }
 0x8e5   :  { %v4707_v39 = vmul.f32 %v4699_v34, %v4677_v35 }
 0x8e6   :  { %v4680_v38 = vpop.xlane.xlu0 %4679 }
 0x8e7   :  { %v4708_v10 = vmul.f32 %v4700_v37, %v4680_v38 }
 0x8e8   :  { %v4686_v2 = vpop.xlane.xlu1 %4685 }
 0x8e9   :  { %v6050_v23 = vpack.c.bf16 %v4708_v10, %v4707_v39  ;;  %v4710_v29 = vmul.f32 %v4702_v40, %v4686_v2 }
 0x8ea   :  { %v4683_v41 = vpop.xlane.xlu0 %4682 }
 0x8eb   :  { %v4709_v44 = vmul.f32 %v4701_v15, %v4683_v41  ;;  %6051 = vmatpush3.bf16.msra.mxu0 %v6050_v23 }
 0x8ec   :  { %6052 = vmatprep.subr.bf16.mxu0 %v6568_v33 }
 0x8ed   :  { %v6053_v48 = vpack.c.bf16 %v4710_v29, %v4709_v44 }
 0x8ee   :  { %v4689_v36 = vpop.xlane.xlu0 %4688  ;;  %v4692_v49 = vpop.xlane.xlu1 %4691 }
 0x8ef   :  { %v4711_v50 = vmul.f32 %v4703_v45, %v4689_v36  ;;  %v4712_v51 = vmul.f32 %v4704_v47, %v4692_v49  ;;  %6054 = vmatpush3.bf16.msra.mxu0 %v6053_v48 }
 0x8f0   :  { %6055 = vmatprep.subr.bf16.mxu0 %v6568_v33 }
 0x8f1   :  { %v6056_v56 = vpack.c.bf16 %v4712_v51, %v4711_v50 }
 0x8f2   :  { %v4695_v57 = vpop.xlane.xlu0 %4694  ;;  %v4698_v59 = vpop.xlane.xlu1 %4697 }
 0x8f3   :  { %v4713_v60 = vmul.f32 %v4705_v53, %v4695_v57  ;;  %v4714_v61 = vmul.f32 %v4706_v54, %v4698_v59  ;;  %6057 = vmatpush3.bf16.msra.mxu0 %v6056_v56 }
 0x8f4   :  { %6058 = vmatprep.subr.bf16.mxu0 %v6568_v33 }
 0x8f5   :  { %v6059_v62 = vpack.c.bf16 %v4714_v61, %v4713_v60 }
 0x8f7   :  { %6060 = vmatpush3.bf16.msra.mxu0 %v6059_v62 }
 0x8fa   :  { %6047 = vmatmul.mubr.msk.f32.vlgmr.msra.gmra.mrb[56].mxu0 %vm855_vm0, %v4715_v63 }
 0x9cd   :  { %v4792_v3 = vpop.f32.mrb[56].mxu0 }
 0x9ce   :  { %v4793_v17 = vadd.f32 %v5316_v1, %v4792_v3  ;;  %v6048_v43 = vpop.f32.mrb[57].mxu0 }
 0x9d0   :  { %4796 = vst [vmem:[#allocation2] sm:$0xff] %v4793_v17 }
 0x9d1   :  { %6541 = shalt.err (!%p6538_p4)
}
 0x9d2   :  { %s6542_s6 = scalar_lea.hbm %s7778_s15, 128 }
 0x9d3   :  { %p6543_p5 = scmp.ne.s32.totalorder %s7778_s15, %s6542_s6  ;;  %p6546_p6 = scmp.lt.u32.totalorder %s6542_s6, %s7778_s15 }
 0x9d5   :  { %p6548_p7 = pnand %p6546_p6, %p6543_p5 }
 0x9d7   :  { %6551 = shalt.err (!%p6548_p7)
}
 0x9d8   :  { %4806 = dma.vmem_to_hbm [thread:$0]  %s4804_s24, 128, %s7778_s15, [#allocation3]  }
 0x9d9   :  { %6552 = dma.done.wait [#allocation3], 128  }
 0x9da   :  { %6553 = vsyncadd [#allocation3], 4294967168 }
 0x9db   :  { %4810 = vsyncpa [#allocation3], 1 }

</bundles_post_ra>
